<compile_context>
chip_gen: v7x
topology: tpu7x:2x2x1
jax: 0.10.0
libtpu: 0.0.40
codegen_flags: <defaults>
</compile_context>

<pallas_src>
import functools
import math

import jax
import jax.numpy as jnp
from jax.experimental import pallas as pl
from jax.experimental.pallas import tpu as pltpu


def _conv12(x_ref, w1_ref, b1_ref, w2_ref):
    """conv1 (1x1 + bias) -> LeakyReLU(0.2) -> conv2 (1x1, no bias).

    Layout: channels in sublanes, pixels in lanes.
      x_ref : (Cin,  TILE_M) bf16
      w1_ref: (ndf,  Cin)    bf16
      b1_ref: (ndf,  1)      f32
      w2_ref: (2ndf, ndf)    bf16
    Returns h2 : (2ndf, TILE_M) f32.
    """
    h1 = jnp.dot(w1_ref[...], x_ref[...], preferred_element_type=jnp.float32)
    h1 = h1 + b1_ref[...]
    h1 = jnp.maximum(h1, 0.2 * h1)          # LeakyReLU: mul+max (2 VALU ops)
    h2 = jnp.dot(w2_ref[...], h1.astype(jnp.bfloat16),
                 preferred_element_type=jnp.float32)
    return h2


def _stats_kernel(x_ref, w1_ref, b1_ref, w2_ref, sum_ref, sumsq_ref):
    """Pass 1: accumulate per-channel sum / sum-of-squares of conv2 output.

    Grid is (n_split, tiles_per_split); axis 0 is "parallel" (per-split
    partial accumulators -> both TCs on v7x), axis 1 is the reduction.
    Padded pixel columns are NOT masked here; the wrapper subtracts their
    known constant contribution.
    """
    @pl.when(pl.program_id(1) == 0)
    def _():
        sum_ref[...] = jnp.zeros_like(sum_ref)
        sumsq_ref[...] = jnp.zeros_like(sumsq_ref)

    h2 = _conv12(x_ref, w1_ref, b1_ref, w2_ref)
    sum_ref[0] += jnp.sum(h2, axis=1, keepdims=True)
    sumsq_ref[0] += jnp.sum(h2 * h2, axis=1, keepdims=True)


def _apply_kernel(x_ref, w1_ref, b1_ref, w2s_ref, shift_ref, w3_ref, o_ref):
    """Pass 2: conv1 -> conv2 (BN scale folded into w2) -> +shift ->
    LeakyReLU -> conv3 (1x128 MXU matmul, lane-dense (1, TILE_M) store)."""
    h2 = _conv12(x_ref, w1_ref, b1_ref, w2s_ref)
    y = h2 + shift_ref[...]
    y = jnp.maximum(y, 0.2 * y)
    o_ref[...] = jnp.dot(w3_ref[...], y.astype(jnp.bfloat16),
                         preferred_element_type=jnp.float32)


def _choose_tile_m(m):
    """Biggest tile that amortizes grid-step overhead while keeping VMEM and
    padding waste small.  ~1.5 KB of compiler scratch per pixel => 8192 pixels
    is ~12-15 MB, comfortably inside the scoped VMEM limit on all generations
    (including v7x's 64 MiB physical VMEM)."""
    if m <= 8192:
        return ((m + 511) // 512) * 512       # single tile, multiple of 512
    for t in (8192, 4096, 2048):
        if (-m) % t <= m // 16:               # keep padding waste <~6%
            return t
    return 2048


_VMEM_LIMIT = 48 * 1024 * 1024  # headroom for TILE_M=8192; < 64 MiB (v7x)


def pixel_discriminator_forward(x_nchw, params):
    """x_nchw: (N, C, H, W) float32. Returns (N, 1, H, W) float32."""
    w1, b1, w2, gamma, beta, w3 = params
    n, c, h, w = x_nchw.shape
    ndf = w1.shape[0]
    ndf2 = w2.shape[0]
    m = n * h * w

    # NCHW -> (C, M): only the tiny N,C axes move; H*W stays contiguous.
    x_cm = jnp.transpose(x_nchw.reshape(n, c, h * w), (1, 0, 2)).reshape(c, m)

    tile_m = _choose_tile_m(m)
    m_pad = ((m + tile_m - 1) // tile_m) * tile_m
    if m_pad != m:
        x_cm = jnp.pad(x_cm, ((0, 0), (0, m_pad - m)))
    num_tiles = m_pad // tile_m

    # Megacore split for pass 1 (v7x has 2 TCs; harmless elsewhere).
    n_split = 2 if (num_tiles >= 2 and num_tiles % 2 == 0) else 1
    tiles_per_split = num_tiles // n_split

    # bf16 operands for the MXU; BN / bias math in f32.
    x_bf = x_cm.astype(jnp.bfloat16)
    w1_bf = w1.astype(jnp.bfloat16)                      # (ndf, C)
    w2_bf = w2.astype(jnp.bfloat16)                      # (2ndf, ndf)
    b1_col = b1.reshape(ndf, 1).astype(jnp.float32)
    gamma_col = gamma.reshape(ndf2, 1).astype(jnp.float32)
    beta_col = beta.reshape(ndf2, 1).astype(jnp.float32)

    matmul_flops = 2 * m_pad * (c * ndf + ndf * ndf2)
    in_bytes = (x_bf.size * 2 + w1_bf.size * 2 + w2_bf.size * 2
                + b1_col.size * 4)

    # ---- pass 1: per-channel sum / sum-of-squares of conv2 output -----------
    sum_part, sumsq_part = pl.pallas_call(
        _stats_kernel,
        out_shape=(jax.ShapeDtypeStruct((n_split, ndf2, 1), jnp.float32),
                   jax.ShapeDtypeStruct((n_split, ndf2, 1), jnp.float32)),
        grid=(n_split, tiles_per_split),
        in_specs=[
            pl.BlockSpec((c, tile_m),
                         lambda s, i: (0, s * tiles_per_split + i)),  # x tile
            pl.BlockSpec((ndf, c), lambda s, i: (0, 0)),              # w1
            pl.BlockSpec((ndf, 1), lambda s, i: (0, 0)),              # b1
            pl.BlockSpec((ndf2, ndf), lambda s, i: (0, 0)),           # w2
        ],
        out_specs=(pl.BlockSpec((1, ndf2, 1), lambda s, i: (s, 0, 0)),
                   pl.BlockSpec((1, ndf2, 1), lambda s, i: (s, 0, 0))),
        compiler_params=pltpu.CompilerParams(
            dimension_semantics=("parallel", "arbitrary"),
            vmem_limit_bytes=_VMEM_LIMIT),
        cost_estimate=pl.CostEstimate(
            flops=matmul_flops + 3 * m_pad * ndf2, transcendentals=0,
            bytes_accessed=in_bytes + 2 * n_split * ndf2 * 4),
    )(x_bf, w1_bf, b1_col, w2_bf)

    sum_c = jnp.sum(sum_part, axis=0)        # (ndf2, 1)
    sumsq_c = jnp.sum(sumsq_part, axis=0)    # (ndf2, 1)

    # Padded x columns are zero, so each contributes the constant column
    # h2_pad = w2 @ leaky_relu(b1) (same bf16 path as the kernel).  Subtract.
    npad = m_pad - m
    if npad:
        b1_act = jnp.maximum(b1_col, 0.2 * b1_col)
        b1_act = b1_act.astype(jnp.bfloat16).astype(jnp.float32)     # (ndf,1)
        h2_pad = jnp.sum(w2_bf.astype(jnp.float32) * b1_act.T, axis=1,
                         keepdims=True)                              # (ndf2,1)
        sum_c = sum_c - jnp.float32(npad) * h2_pad
        sumsq_c = sumsq_c - jnp.float32(npad) * (h2_pad * h2_pad)

    # BatchNorm2d (training mode): batch mean, biased variance, eps=1e-5,
    # folded with gamma/beta into one per-channel scale + shift; the scale is
    # further folded into w2 so pass 2's epilogue is a single add per element.
    # TODO(synk): E[x^2]-E[x]^2 can lose precision vs Welford for large-mean
    # activations / very large M; adequate for this network's activation scale.
    count = jnp.float32(m)
    mean = sum_c / count
    var = jnp.maximum(sumsq_c / count - mean * mean, 0.0)
    scale = gamma_col * jax.lax.rsqrt(var + 1e-5)                    # (ndf2,1)
    shift = beta_col - mean * scale                                  # (ndf2,1)
    w2_scaled_bf = (w2.astype(jnp.float32) * scale).astype(jnp.bfloat16)
    w3_row_bf = w3.reshape(1, ndf2).astype(jnp.bfloat16)             # (1,ndf2)

    # ---- pass 2: recompute conv1/conv2(scaled), +shift, LeakyReLU, conv3 ----
    out_row = pl.pallas_call(
        _apply_kernel,
        out_shape=jax.ShapeDtypeStruct((1, m_pad), jnp.float32),
        grid=(num_tiles,),
        in_specs=[
            pl.BlockSpec((c, tile_m), lambda i: (0, i)),   # x tile
            pl.BlockSpec((ndf, c), lambda i: (0, 0)),      # w1
            pl.BlockSpec((ndf, 1), lambda i: (0, 0)),      # b1
            pl.BlockSpec((ndf2, ndf), lambda i: (0, 0)),   # w2 * BN scale
            pl.BlockSpec((ndf2, 1), lambda i: (0, 0)),     # BN shift
            pl.BlockSpec((1, ndf2), lambda i: (0, 0)),     # w3 (bf16 row)
        ],
        out_specs=pl.BlockSpec((1, tile_m), lambda i: (0, i)),
        compiler_params=pltpu.CompilerParams(
            dimension_semantics=("parallel",),
            vmem_limit_bytes=_VMEM_LIMIT),
        cost_estimate=pl.CostEstimate(
            flops=matmul_flops + 2 * m_pad * ndf2 + 3 * m_pad * ndf2,
            transcendentals=0,
            bytes_accessed=in_bytes + 4 * 2 * ndf2 + 2 * ndf2 + m_pad * 4),
    )(x_bf, w1_bf, b1_col, w2_scaled_bf, shift, w3_row_bf)

    # (1, M) -> (N, 1, H, W)
    return out_row[0, :m].reshape(n, h, w)[:, None, :, :]


def init_params(key, input_nc, ndf=64):
    """PyTorch-style init: kaiming-uniform(a=sqrt(5)) for 1x1 convs gives
    bound = 1/sqrt(fan_in) for both weight and bias; BN gamma=1, beta=0."""
    k1, k2, k3, k4 = jax.random.split(key, 4)

    def u(k, shape, fan_in):
        bound = 1.0 / math.sqrt(float(fan_in))
        return jax.random.uniform(k, shape, jnp.float32, -bound, bound)

    w1 = u(k1, (ndf, input_nc), input_nc)          # Conv2d weight (Cout, Cin)
    b1 = u(k2, (ndf,), input_nc)
    w2 = u(k3, (2 * ndf, ndf), ndf)
    gamma = jnp.ones((2 * ndf,), jnp.float32)
    beta = jnp.zeros((2 * ndf,), jnp.float32)
    w3 = u(k4, (1, 2 * ndf), 2 * ndf)
    return (w1, b1, w2, gamma, beta, w3)


def _reference_forward(x_nchw, params):
    """Pure-JAX f32 reference (matches the PyTorch module in training mode)."""
    w1, b1, w2, gamma, beta, w3 = params
    n, c, h, w = x_nchw.shape
    x2d = jnp.transpose(x_nchw, (0, 2, 3, 1)).reshape(-1, c)
    h1 = x2d @ w1.T + b1
    h1 = jnp.where(h1 >= 0.0, h1, 0.2 * h1)
    h2 = h1 @ w2.T
    mean = jnp.mean(h2, axis=0)
    var = jnp.mean((h2 - mean) ** 2, axis=0)
    y = (h2 - mean) * jax.lax.rsqrt(var + 1e-5) * gamma + beta
    y = jnp.where(y >= 0.0, y, 0.2 * y)
    o = y @ w3.T
    return jnp.transpose(o.reshape(n, h, w, 1), (0, 3, 1, 2))


if __name__ == "__main__":
    key = jax.random.PRNGKey(0)
    k_x, k_p = jax.random.split(key)

    N, C, H, W = 2, 4, 16, 16     # input_nc = 4
    NDF = 64

    x = jax.random.normal(k_x, (N, C, H, W), jnp.float32)
    params = init_params(k_p, input_nc=C, ndf=NDF)

    fwd = jax.jit(pixel_discriminator_forward)
    out = jax.block_until_ready(fwd(x, params))

    assert out.shape == (N, 1, H, W), out.shape
    assert bool(jnp.all(jnp.isfinite(out)))

    # Sanity check against an f32 reference (bf16 matmuls -> loose tolerance).
    ref = _reference_forward(x, params)
    max_err = float(jnp.max(jnp.abs(out - ref)))
    assert max_err < 0.2, f"max abs err vs f32 reference: {max_err}"

    print("KERNEL_OK")
</pallas_src>

<mosaic_0001>
module attributes {stable_mosaic.version = 11 : i64} {
  func.func @_stats_kernel(%arg0: i32, %arg1: i32, %arg2: memref<4x512xbf16, #tpu.memory_space<vmem>>, %arg3: memref<64x4xbf16, #tpu.memory_space<vmem>>, %arg4: memref<64x1xf32, #tpu.memory_space<vmem>>, %arg5: memref<128x64xbf16, #tpu.memory_space<vmem>>, %arg6: memref<1x128x1xf32, #tpu.memory_space<vmem>>, %arg7: memref<1x128x1xf32, #tpu.memory_space<vmem>>) attributes {dimension_semantics = [#tpu.dimension_semantics<parallel>, #tpu.dimension_semantics<arbitrary>], iteration_bounds = array<i64: 1, 1>, scalar_prefetch = 0 : i64, scratch_operands = 0 : i64, tpu.core_type = #tpu.core_type<tc>, window_params = [{transform_indices = @transform_0, window_bounds = array<i64: 4, 512>}, {pipeline_mode = #tpu.pipeline_mode<synchronous>, transform_indices = @transform_1, window_bounds = array<i64: 64, 4>}, {pipeline_mode = #tpu.pipeline_mode<synchronous>, transform_indices = @transform_2, window_bounds = array<i64: 64, 1>}, {pipeline_mode = #tpu.pipeline_mode<synchronous>, transform_indices = @transform_3, window_bounds = array<i64: 128, 64>}, {transform_indices = @transform_4, window_bounds = array<i64: 1, 128, 1>}, {transform_indices = @transform_5, window_bounds = array<i64: 1, 128, 1>}]} {
    %c0_i32 = arith.constant 0 : i32
    %0 = arith.cmpi eq, %arg1, %c0_i32 : i32
    %1 = arith.extui %0 : i1 to i32
    %c0_i32_0 = arith.constant 0 : i32
    %2 = arith.cmpi ne, %1, %c0_i32_0 : i32
    scf.if %2 {
      %cst_24 = arith.constant 0.000000e+00 : f32
      %32 = vector.broadcast %cst_24 : f32 to vector<1x128x1xf32>
      %c0_25 = arith.constant 0 : index
      %c0_26 = arith.constant 0 : index
      %c0_27 = arith.constant 0 : index
      %33 = vector.load %arg6[%c0_25, %c0_26, %c0_27] : memref<1x128x1xf32, #tpu.memory_space<vmem>>, vector<1x128x1xf32>
      tpu.vector_store %arg6[%c0_25, %c0_26, %c0_27], %32 {strides = array<i32>} : memref<1x128x1xf32, #tpu.memory_space<vmem>>, vector<1x128x1xf32>,
      %cst_28 = arith.constant 0.000000e+00 : f32
      %34 = vector.broadcast %cst_28 : f32 to vector<1x128x1xf32>
      %c0_29 = arith.constant 0 : index
      %c0_30 = arith.constant 0 : index
      %c0_31 = arith.constant 0 : index
      %35 = vector.load %arg7[%c0_29, %c0_30, %c0_31] : memref<1x128x1xf32, #tpu.memory_space<vmem>>, vector<1x128x1xf32>
      tpu.vector_store %arg7[%c0_29, %c0_30, %c0_31], %34 {strides = array<i32>} : memref<1x128x1xf32, #tpu.memory_space<vmem>>, vector<1x128x1xf32>,
    } else {
    }
    %c0 = arith.constant 0 : index
    %c0_1 = arith.constant 0 : index
    %3 = vector.load %arg3[%c0, %c0_1] : memref<64x4xbf16, #tpu.memory_space<vmem>>, vector<64x4xbf16>
    %c0_2 = arith.constant 0 : index
    %c0_3 = arith.constant 0 : index
    %4 = vector.load %arg2[%c0_2, %c0_3] : memref<4x512xbf16, #tpu.memory_space<vmem>>, vector<4x512xbf16>
    %cst = arith.constant dense<0.000000e+00> : vector<64x512xf32>
    %5 = tpu.matmul %3, %4, %cst {dimension_numbers = #tpu.dot_dimension_numbers<[1], [0], [0], [1], [0, 0, 1, 1], [], []>} : vector<64x4xbf16>, vector<4x512xbf16>, vector<64x512xf32> -> vector<64x512xf32>
    %c0_4 = arith.constant 0 : index
    %c0_5 = arith.constant 0 : index
    %6 = vector.load %arg4[%c0_4, %c0_5] : memref<64x1xf32, #tpu.memory_space<vmem>>, vector<64x1xf32>
    %7 = vector.broadcast %6 : vector<64x1xf32> to vector<64x512xf32>
    %8 = arith.addf %5, %7 : vector<64x512xf32>
    %cst_6 = arith.constant 2.000000e-01 : f32
    %9 = vector.broadcast %cst_6 : f32 to vector<64x512xf32>
    %10 = arith.mulf %9, %8 : vector<64x512xf32>
    %11 = arith.maximumf %8, %10 : vector<64x512xf32>
    %c0_7 = arith.constant 0 : index
    %c0_8 = arith.constant 0 : index
    %12 = vector.load %arg5[%c0_7, %c0_8] : memref<128x64xbf16, #tpu.memory_space<vmem>>, vector<128x64xbf16>
    %13 = arith.truncf %11 : vector<64x512xf32> to vector<64x512xbf16>
    %cst_9 = arith.constant dense<0.000000e+00> : vector<128x512xf32>
    %14 = tpu.matmul %12, %13, %cst_9 {dimension_numbers = #tpu.dot_dimension_numbers<[1], [0], [0], [1], [0, 0, 1, 1], [], []>} : vector<128x64xbf16>, vector<64x512xbf16>, vector<128x512xf32> -> vector<128x512xf32>
    %c0_10 = arith.constant 0 : index
    %c0_11 = arith.constant 0 : index
    %c0_12 = arith.constant 0 : index
    %15 = vector.load %arg6[%c0_10, %c0_11, %c0_12] : memref<1x128x1xf32, #tpu.memory_space<vmem>>, vector<1x128x1xf32>
    %16 = vector.shape_cast %15 : vector<1x128x1xf32> to vector<128x1xf32>
    %cst_13 = arith.constant dense<0.000000e+00> : vector<128xf32>
    %17 = vector.multi_reduction <add>, %14, %cst_13 [1] : vector<128x512xf32> to vector<128xf32>
    %18 = vector.shape_cast %17 : vector<128xf32> to vector<128x1xf32>
    %19 = arith.addf %16, %18 : vector<128x1xf32>
    %c0_14 = arith.constant 0 : index
    %c0_15 = arith.constant 0 : index
    %c0_16 = arith.constant 0 : index
    %20 = vector.load %arg6[%c0_14, %c0_15, %c0_16] : memref<1x128x1xf32, #tpu.memory_space<vmem>>, vector<1x128x1xf32>
    %21 = vector.shape_cast %20 : vector<1x128x1xf32> to vector<128x1xf32>
    %22 = vector.shape_cast %19 : vector<128x1xf32> to vector<1x128x1xf32>
    tpu.vector_store %arg6[%c0_14, %c0_15, %c0_16], %22 {strides = array<i32>} : memref<1x128x1xf32, #tpu.memory_space<vmem>>, vector<1x128x1xf32>,
    %c0_17 = arith.constant 0 : index
    %c0_18 = arith.constant 0 : index
    %c0_19 = arith.constant 0 : index
    %23 = vector.load %arg7[%c0_17, %c0_18, %c0_19] : memref<1x128x1xf32, #tpu.memory_space<vmem>>, vector<1x128x1xf32>
    %24 = vector.shape_cast %23 : vector<1x128x1xf32> to vector<128x1xf32>
    %25 = arith.mulf %14, %14 : vector<128x512xf32>
    %cst_20 = arith.constant dense<0.000000e+00> : vector<128xf32>
    %26 = vector.multi_reduction <add>, %25, %cst_20 [1] : vector<128x512xf32> to vector<128xf32>
    %27 = vector.shape_cast %26 : vector<128xf32> to vector<128x1xf32>
    %28 = arith.addf %24, %27 : vector<128x1xf32>
    %c0_21 = arith.constant 0 : index
    %c0_22 = arith.constant 0 : index
    %c0_23 = arith.constant 0 : index
    %29 = vector.load %arg7[%c0_21, %c0_22, %c0_23] : memref<1x128x1xf32, #tpu.memory_space<vmem>>, vector<1x128x1xf32>
    %30 = vector.shape_cast %29 : vector<1x128x1xf32> to vector<128x1xf32>
    %31 = vector.shape_cast %28 : vector<128x1xf32> to vector<1x128x1xf32>
    tpu.vector_store %arg7[%c0_21, %c0_22, %c0_23], %31 {strides = array<i32>} : memref<1x128x1xf32, #tpu.memory_space<vmem>>, vector<1x128x1xf32>,
    return
  }
  func.func @transform_0(%arg0: i32, %arg1: i32) -> (i32, i32) {
    %c1_i32 = arith.constant 1 : i32
    %0 = arith.muli %arg0, %c1_i32 : i32
    %1 = arith.addi %0, %arg1 : i32
    %c0_i32 = arith.constant 0 : i32
    %c0_i32_0 = arith.constant 0 : i32
    return %c0_i32, %1 : i32, i32
  }
  func.func @transform_1(%arg0: i32, %arg1: i32) -> (i32, i32) {
    %c0_i32 = arith.constant 0 : i32
    %c0_i32_0 = arith.constant 0 : i32
    %c0_i32_1 = arith.constant 0 : i32
    return %c0_i32, %c0_i32_0 : i32, i32
  }
  func.func @transform_2(%arg0: i32, %arg1: i32) -> (i32, i32) {
    %c0_i32 = arith.constant 0 : i32
    %c0_i32_0 = arith.constant 0 : i32
    %c0_i32_1 = arith.constant 0 : i32
    return %c0_i32, %c0_i32_0 : i32, i32
  }
  func.func @transform_3(%arg0: i32, %arg1: i32) -> (i32, i32) {
    %c0_i32 = arith.constant 0 : i32
    %c0_i32_0 = arith.constant 0 : i32
    %c0_i32_1 = arith.constant 0 : i32
    return %c0_i32, %c0_i32_0 : i32, i32
  }
  func.func @transform_4(%arg0: i32, %arg1: i32) -> (i32, i32, i32) {
    %c0_i32 = arith.constant 0 : i32
    %c0_i32_0 = arith.constant 0 : i32
    %c0_i32_1 = arith.constant 0 : i32
    return %arg0, %c0_i32, %c0_i32_0 : i32, i32, i32
  }
  func.func @transform_5(%arg0: i32, %arg1: i32) -> (i32, i32, i32) {
    %c0_i32 = arith.constant 0 : i32
    %c0_i32_0 = arith.constant 0 : i32
    %c0_i32_1 = arith.constant 0 : i32
    return %arg0, %c0_i32, %c0_i32_0 : i32, i32, i32
  }
}

module attributes {stable_mosaic.version = 11 : i64} {
  func.func @_apply_kernel(%arg0: i32, %arg1: memref<4x512xbf16, #tpu.memory_space<vmem>>, %arg2: memref<64x4xbf16, #tpu.memory_space<vmem>>, %arg3: memref<64x1xf32, #tpu.memory_space<vmem>>, %arg4: memref<128x64xbf16, #tpu.memory_space<vmem>>, %arg5: memref<128x1xf32, #tpu.memory_space<vmem>>, %arg6: memref<1x128xbf16, #tpu.memory_space<vmem>>, %arg7: memref<1x512xf32, #tpu.memory_space<vmem>>) attributes {dimension_semantics = [#tpu.dimension_semantics<parallel>], iteration_bounds = array<i64: 1>, scalar_prefetch = 0 : i64, scratch_operands = 0 : i64, tpu.core_type = #tpu.core_type<tc>, window_params = [{transform_indices = @transform_0, window_bounds = array<i64: 4, 512>}, {pipeline_mode = #tpu.pipeline_mode<synchronous>, transform_indices = @transform_1, window_bounds = array<i64: 64, 4>}, {pipeline_mode = #tpu.pipeline_mode<synchronous>, transform_indices = @transform_2, window_bounds = array<i64: 64, 1>}, {pipeline_mode = #tpu.pipeline_mode<synchronous>, transform_indices = @transform_3, window_bounds = array<i64: 128, 64>}, {pipeline_mode = #tpu.pipeline_mode<synchronous>, transform_indices = @transform_4, window_bounds = array<i64: 128, 1>}, {pipeline_mode = #tpu.pipeline_mode<synchronous>, transform_indices = @transform_5, window_bounds = array<i64: 1, 128>}, {transform_indices = @transform_6, window_bounds = array<i64: 1, 512>}]} {
    %c0 = arith.constant 0 : index
    %c0_0 = arith.constant 0 : index
    %0 = vector.load %arg2[%c0, %c0_0] : memref<64x4xbf16, #tpu.memory_space<vmem>>, vector<64x4xbf16>
    %c0_1 = arith.constant 0 : index
    %c0_2 = arith.constant 0 : index
    %1 = vector.load %arg1[%c0_1, %c0_2] : memref<4x512xbf16, #tpu.memory_space<vmem>>, vector<4x512xbf16>
    %cst = arith.constant dense<0.000000e+00> : vector<64x512xf32>
    %2 = tpu.matmul %0, %1, %cst {dimension_numbers = #tpu.dot_dimension_numbers<[1], [0], [0], [1], [0, 0, 1, 1], [], []>} : vector<64x4xbf16>, vector<4x512xbf16>, vector<64x512xf32> -> vector<64x512xf32>
    %c0_3 = arith.constant 0 : index
    %c0_4 = arith.constant 0 : index
    %3 = vector.load %arg3[%c0_3, %c0_4] : memref<64x1xf32, #tpu.memory_space<vmem>>, vector<64x1xf32>
    %4 = vector.broadcast %3 : vector<64x1xf32> to vector<64x512xf32>
    %5 = arith.addf %2, %4 : vector<64x512xf32>
    %cst_5 = arith.constant 2.000000e-01 : f32
    %6 = vector.broadcast %cst_5 : f32 to vector<64x512xf32>
    %7 = arith.mulf %6, %5 : vector<64x512xf32>
    %8 = arith.maximumf %5, %7 : vector<64x512xf32>
    %c0_6 = arith.constant 0 : index
    %c0_7 = arith.constant 0 : index
    %9 = vector.load %arg4[%c0_6, %c0_7] : memref<128x64xbf16, #tpu.memory_space<vmem>>, vector<128x64xbf16>
    %10 = arith.truncf %8 : vector<64x512xf32> to vector<64x512xbf16>
    %cst_8 = arith.constant dense<0.000000e+00> : vector<128x512xf32>
    %11 = tpu.matmul %9, %10, %cst_8 {dimension_numbers = #tpu.dot_dimension_numbers<[1], [0], [0], [1], [0, 0, 1, 1], [], []>} : vector<128x64xbf16>, vector<64x512xbf16>, vector<128x512xf32> -> vector<128x512xf32>
    %c0_9 = arith.constant 0 : index
    %c0_10 = arith.constant 0 : index
    %12 = vector.load %arg5[%c0_9, %c0_10] : memref<128x1xf32, #tpu.memory_space<vmem>>, vector<128x1xf32>
    %13 = vector.broadcast %12 : vector<128x1xf32> to vector<128x512xf32>
    %14 = arith.addf %11, %13 : vector<128x512xf32>
    %cst_11 = arith.constant 2.000000e-01 : f32
    %15 = vector.broadcast %cst_11 : f32 to vector<128x512xf32>
    %16 = arith.mulf %15, %14 : vector<128x512xf32>
    %17 = arith.maximumf %14, %16 : vector<128x512xf32>
    %c0_12 = arith.constant 0 : index
    %c0_13 = arith.constant 0 : index
    %18 = vector.load %arg6[%c0_12, %c0_13] : memref<1x128xbf16, #tpu.memory_space<vmem>>, vector<1x128xbf16>
    %19 = arith.truncf %17 : vector<128x512xf32> to vector<128x512xbf16>
    %cst_14 = arith.constant dense<0.000000e+00> : vector<1x512xf32>
    %20 = tpu.matmul %18, %19, %cst_14 {dimension_numbers = #tpu.dot_dimension_numbers<[1], [0], [0], [1], [0, 0, 1, 1], [], []>} : vector<1x128xbf16>, vector<128x512xbf16>, vector<1x512xf32> -> vector<1x512xf32>
    %c0_15 = arith.constant 0 : index
    %c0_16 = arith.constant 0 : index
    %21 = vector.load %arg7[%c0_15, %c0_16] : memref<1x512xf32, #tpu.memory_space<vmem>>, vector<1x512xf32>
    tpu.vector_store %arg7[%c0_15, %c0_16], %20 {strides = array<i32>} : memref<1x512xf32, #tpu.memory_space<vmem>>, vector<1x512xf32>,
    return
  }
  func.func @transform_0(%arg0: i32) -> (i32, i32) {
    %c0_i32 = arith.constant 0 : i32
    %c0_i32_0 = arith.constant 0 : i32
    return %c0_i32, %arg0 : i32, i32
  }
  func.func @transform_1(%arg0: i32) -> (i32, i32) {
    %c0_i32 = arith.constant 0 : i32
    %c0_i32_0 = arith.constant 0 : i32
    %c0_i32_1 = arith.constant 0 : i32
    return %c0_i32, %c0_i32_0 : i32, i32
  }
  func.func @transform_2(%arg0: i32) -> (i32, i32) {
    %c0_i32 = arith.constant 0 : i32
    %c0_i32_0 = arith.constant 0 : i32
    %c0_i32_1 = arith.constant 0 : i32
    return %c0_i32, %c0_i32_0 : i32, i32
  }
  func.func @transform_3(%arg0: i32) -> (i32, i32) {
    %c0_i32 = arith.constant 0 : i32
    %c0_i32_0 = arith.constant 0 : i32
    %c0_i32_1 = arith.constant 0 : i32
    return %c0_i32, %c0_i32_0 : i32, i32
  }
  func.func @transform_4(%arg0: i32) -> (i32, i32) {
    %c0_i32 = arith.constant 0 : i32
    %c0_i32_0 = arith.constant 0 : i32
    %c0_i32_1 = arith.constant 0 : i32
    return %c0_i32, %c0_i32_0 : i32, i32
  }
  func.func @transform_5(%arg0: i32) -> (i32, i32) {
    %c0_i32 = arith.constant 0 : i32
    %c0_i32_0 = arith.constant 0 : i32
    %c0_i32_1 = arith.constant 0 : i32
    return %c0_i32, %c0_i32_0 : i32, i32
  }
  func.func @transform_6(%arg0: i32) -> (i32, i32) {
    %c0_i32 = arith.constant 0 : i32
    %c0_i32_0 = arith.constant 0 : i32
    return %c0_i32, %arg0 : i32, i32
  }
}

</mosaic_0001>

<bundles_post_ra>
// kernel: squeeze.1
= control target key start
LH: loop header
LB: loop body
LE: loop exit
PB: predicated region body
PF: predicated region fallthrough
CT: control target
= control target key end

     0   :  { %s135_s0 = inlined_call_operand.vmem [shape: f32[512], index: 0, kind: input, shape index: {}]   ;;  %s136_s1 = inlined_call_operand.hbm [shape: f32[2,1,16,16], index: 1, kind: output, shape index: {}]  }
   0x1   :  { %v5_v0 = vld [vmem:[%s135_s0] sm:$0xf] }
   0x2   :  { %6 = vst [vmem:[#allocation2] sm:$0xf] %v5_v0 }
   0x3   :  { %2 = vsyncpa [#allocation1], 0  ;;  %s94_s0 = smov 112   ;;  %s95_s8 = smov 80   ;;  %vm8_vm0 = vcmask 130048  }
   0x4   :  { %s96_s9 = smov 96   ;;  %s97_s10 = smov 64  }
   0x5   :  { %s98_s11 = smov 48   ;;  %s99_s12 = smov 32  }
   0x6   :  { %s100_s13 = smov 16   ;;  %s101_s14 = smov [#allocation0]  }
   0x7   :  { %s56_s15 = sshll.u32 %s101_s14, 4  ;;  %s57_s15 = int_to_ptr.vmem [resolvable:$true] %s56_s15 }
   0x8   :  { %s70_s16 = scalar_lea.vmem %s57_s15, 512  ;;  %p75_p1 = scmp.lt.s32.totalorder %s57_s15, %s57_s15 }
   0x9   :  { %v10_v1 = vld [vmem:[#allocation2] sm:$0xf]   ;;  %p71_p0 = scmp.ne.s32.totalorder %s57_s15, %s70_s16  ;;  %p76_p2 = scmp.lt.s32.totalorder %s70_s16, %s70_s16 }
   0xa   :  { %v22_v2 = vld [vmem:[#allocation2] sm:$0xf]   ;;  %11 = vrot.lane.b32.xlu0 %v10_v1, %s94_s0 }
   0xb   :  { %23 = vrot.lane.b32.xlu1 %v22_v2, %s95_s8  ;;  %v16_v3 = vld [vmem:[#allocation2] sm:$0xf]   ;;  %p77_p3 = por %p76_p2, %p75_p1 }
   0xc   :  { %v28_v4 = vld [vmem:[#allocation2] sm:$0xf]  }
   0xd   :  { %v7_v5 = vld [vmem:[#allocation2] sm:$0xf]   ;;  %p78_p4 = pnand %p77_p3, %p71_p0 }
   0xe   :  { %9 = vst.msk [vmem:[#allocation0] ss:$8 sm:$0xf] %vm8_vm0, %v7_v5   ;;  %17 = vrot.lane.b32.xlu0 %v16_v3, %s96_s9  ;;  %v34_v6 = vld [vmem:[#allocation2] sm:$0xf]  }
   0xf   :  { %29 = vrot.lane.b32.xlu1 %v28_v4, %s97_s10  ;;  %v40_v7 = vld [vmem:[#allocation2] sm:$0xf]  }
  0x10   :  { %v46_v8 = vld [vmem:[#allocation2] sm:$0xf]  }
  0x12   :  { %35 = vrot.lane.b32.xlu0 %v34_v6, %s98_s11 }
  0x13   :  { %41 = vrot.lane.b32.xlu1 %v40_v7, %s99_s12 }
  0x16   :  { %47 = vrot.lane.b32.xlu0 %v46_v8, %s100_s13 }
  0x7c   :  { %v12_v9 = vpop.permute.xlu0 %11  }
  0x7d   :  { %v24_v10 = vpop.permute.xlu1 %23   ;;  %15 = vst.msk [vmem:[#allocation0 + $0x1] ss:$8 sm:$0xf] %vm8_vm0, %v12_v9  }
  0x7e   :  { %27 = vst.msk [vmem:[#allocation0 + $0x3] ss:$8 sm:$0xf] %vm8_vm0, %v24_v10  }
  0x80   :  { %v18_v11 = vpop.permute.xlu0 %17  }
  0x81   :  { %v30_v12 = vpop.permute.xlu1 %29   ;;  %21 = vst.msk [vmem:[#allocation0 + $0x2] ss:$8 sm:$0xf] %vm8_vm0, %v18_v11  }
  0x82   :  { %33 = vst.msk [vmem:[#allocation0 + $0x4] ss:$8 sm:$0xf] %vm8_vm0, %v30_v12  }
  0x84   :  { %v36_v13 = vpop.permute.xlu0 %35  }
  0x85   :  { %v42_v14 = vpop.permute.xlu1 %41   ;;  %39 = vst.msk [vmem:[#allocation0 + $0x5] ss:$8 sm:$0xf] %vm8_vm0, %v36_v13  }
  0x86   :  { %45 = vst.msk [vmem:[#allocation0 + $0x6] ss:$8 sm:$0xf] %vm8_vm0, %v42_v14  }
  0x88   :  { %v48_v15 = vpop.permute.xlu0 %47  }
  0x89   :  { %51 = vst.msk [vmem:[#allocation0 + $0x7] ss:$8 sm:$0xf] %vm8_vm0, %v48_v15  }
  0x8a   :  { %81 = shalt.err (!%p78_p4)
}
  0x8b   :  { %s82_s19 = scalar_lea.hbm %s136_s1, 512 }
  0x8c   :  { %p83_p5 = scmp.ne.s32.totalorder %s136_s1, %s82_s19  ;;  %p86_p6 = scmp.lt.u32.totalorder %s82_s19, %s136_s1 }
  0x8e   :  { %p88_p7 = pnand %p86_p6, %p83_p5 }
  0x90   :  { %91 = shalt.err (!%p88_p7)
}
  0x91   :  { %59 = dma.vmem_to_hbm [thread:$0]  %s57_s15, 512, %s136_s1, [#allocation1]  }
  0x92   :  { %92 = dma.done.wait [#allocation1], 512  }
  0x93   :  { %93 = vsyncadd [#allocation1], 4294966784 }
  0x94   :  { %61 = vsyncpa [#allocation1], 1 }

// kernel: pixel_discriminator_forward.3
= control target key start
LH: loop header
LB: loop body
LE: loop exit
PB: predicated region body
PF: predicated region fallthrough
CT: control target
= control target key end

     0   :  { %v106_v0 = vlaneseq  ;;  %v1111_v2 = vmov 1983009808   ;;  %v1112_v4 = vmov 0   ;;  %vm132_vm0 = vcmask 1041408   ;;  %s1324_s0 = inlined_call_operand.vmem [shape: bf16[4,512], index: 0, kind: input, shape index: {}]   ;;  %s1325_s1 = inlined_call_operand.vmem [shape: bf16[64,4], index: 1, kind: input, shape index: {}]   ;;  %s1326_s2 = inlined_call_operand.vmem [shape: f32[64,1], index: 2, kind: input, shape index: {}]   ;;  %s1327_s4 = inlined_call_operand.vmem [shape: f32[128,1], index: 4, kind: input, shape index: {}]   ;;  %s1328_s3 = inlined_call_operand.vmem [shape: bf16[128,64], index: 3, kind: input, shape index: {}]   ;;  %s1329_s5 = inlined_call_operand.vmem [shape: bf16[1,128], index: 5, kind: input, shape index: {}]   ;;  %s1330_s6 = inlined_call_operand.vmem [shape: f32[1,512], index: 6, kind: output, shape index: {}]  }
   0x1   :  { %v32_v1 = vld [vmem:[%s1324_s0] sm:$0xff]  ;;  %v104_v3 = vunpack.c.l.s4 %v1111_v2  ;;  %177 = vmatprep.mubr.bf16.mxu0 %v1112_v4  ;;  %250 = vmatprep.mubr.bf16.mxu1 %v1112_v4  ;;  %v35_v10 = vld [vmem:[%s1326_s2 + $0x10] sm:$0xff]  ;;  %v34_v13 = vld [vmem:[%s1326_s2 + $0x8] sm:$0xff]  ;;  %vm119_vm1 = vcmask 31744   ;;  %vm523_vm2 = vcmask 523264  }
   0x2   :  { %v1155_v5 = vshrl.u32 %v106_v0, 7  ;;  %1096 = vset.pattern.permute.xlu0 %v1112_v4  ;;  %1097 = vset.pattern.permute.xlu1 %v1112_v4  ;;  %v102_v7 = vcombine.high %v32_v1, %v32_v1  ;;  %v33_v9 = vld [vmem:[%s1326_s2] sm:$0xff]  ;;  %v36_v18 = vld [vmem:[%s1326_s2 + $0x18] sm:$0xff]  ;;  %v38_v21 = vld [vmem:[%s1326_s2 + $0x28] sm:$0xff]  ;;  %vm1048_vm3 = vcmp.lt.s32.totalorder %v106_v0, 512 }
   0x3   :  { %v105_v6 = vunpack.c.0.s8 %v104_v3  ;;  %43 = vperm.xlu0 %1096, %v33_v9   ;;  %53 = vperm.xlu1 %1097, %v35_v10   ;;  %v1099_v19 = vld [vmem:[%s1325_s1] sm:$0xff]   ;;  %v39_v22 = vld [vmem:[%s1326_s2 + $0x30] sm:$0xff]  ;;  %v40_v23 = vld [vmem:[%s1326_s2 + $0x38] sm:$0xff] }
   0x4   :  { %v37_v20 = vld [vmem:[%s1326_s2 + $0x20] sm:$0xff]  ;;  %v1100_v24 = vld [vmem:[%s1325_s1 + $0x8] sm:$0xff]   ;;  %v389_v27 = vld [vmem:[%s1327_s4 + $0x10] sm:$0xff] }
   0x5   :  { %v108_v8 = vsub.s32 %v105_v6, %v1155_v5  ;;  %v387_v25 = vld [vmem:[%s1327_s4] sm:$0xff]  ;;  %v388_v26 = vld [vmem:[%s1327_s4 + $0x8] sm:$0xff]  ;;  %v390_v28 = vld [vmem:[%s1327_s4 + $0x18] sm:$0xff] }
   0x6   :  { %v1101_v29 = vld [vmem:[%s1325_s1 + $0x10] sm:$0xff]   ;;  %v391_v30 = vld [vmem:[%s1327_s4 + $0x20] sm:$0xff]  ;;  %v392_v31 = vld [vmem:[%s1327_s4 + $0x28] sm:$0xff] }
   0x7   :  { %v109_v11 = vrot.slane %v32_v1, %v108_v8  ;;  %v116_v12 = vrot.slane %v102_v7, %v108_v8  ;;  %48 = vperm.xlu0 %1096, %v34_v13   ;;  %58 = vperm.xlu1 %1097, %v36_v18   ;;  %v393_v32 = vld [vmem:[%s1327_s4 + $0x30] sm:$0xff]  ;;  %v394_v33 = vld [vmem:[%s1327_s4 + $0x38] sm:$0xff]  ;;  %v395_v35 = vld [vmem:[%s1327_s4 + $0x40] sm:$0xff] }
   0x8   :  { %v1102_v34 = vld [vmem:[%s1325_s1 + $0x18] sm:$0xff]   ;;  %v396_v36 = vld [vmem:[%s1327_s4 + $0x48] sm:$0xff]  ;;  %v397_v37 = vld [vmem:[%s1327_s4 + $0x50] sm:$0xff] }
   0x9   :  { %v117_v14 = vcombine.high %v109_v11, %v109_v11  ;;  %v118_v15 = vcombine.high %v116_v12, %v116_v12  ;;  %v134_v16 = vsel %vm132_vm0, %v109_v11, 0  ;;  %v140_v17 = vsel %vm132_vm0, %v116_v12, 0  ;;  %v398_v38 = vld [vmem:[%s1327_s4 + $0x58] sm:$0xff]  ;;  %v399_v39 = vld [vmem:[%s1327_s4 + $0x60] sm:$0xff]  ;;  %v400_v40 = vld [vmem:[%s1327_s4 + $0x68] sm:$0xff] }
   0xa   :  { %v401_v41 = vld [vmem:[%s1327_s4 + $0x70] sm:$0xff]  ;;  %v402_v42 = vld [vmem:[%s1327_s4 + $0x78] sm:$0xff] }
   0xb   :  { %1059 = vmatprep.subr.msk.bf16.mxu0 %vm132_vm0, %v117_v14  ;;  %1064 = vmatprep.subr.msk.bf16.mxu1 %vm132_vm0, %v118_v15 }
   0xc   :  { %146 = vmatpush1.bf16.msra.mxu0 %v134_v16  ;;  %219 = vmatpush1.bf16.msra.mxu1 %v140_v17 }
   0xd   :  { %63 = vperm.xlu0 %1096, %v37_v20   ;;  %68 = vperm.xlu1 %1097, %v38_v21  }
   0xf   :  { %1060 = vmatmul.mubr.msk.bf16.vlgmr.msra.gmra.mrb[0].mxu0 %vm119_vm1, %v1099_v19  ;;  %1065 = vmatmul.mubr.msk.bf16.vlgmr.msra.gmra.mrb[0].mxu1 %vm119_vm1, %v1099_v19 }
  0x10   :  { %187 = vmatprep.mubr.bf16.mxu0 %v1112_v4  ;;  %260 = vmatprep.mubr.bf16.mxu1 %v1112_v4 }
  0x11   :  { %73 = vperm.xlu0 %1096, %v39_v22   ;;  %78 = vperm.xlu1 %1097, %v40_v23  }
  0x15   :  { %405 = vperm.xlu0 %1096, %v387_v25   ;;  %410 = vperm.xlu1 %1097, %v388_v26  }
  0x17   :  { %1061 = vmatmul.mubr.msk.bf16.gmra.mrb[4].mxu0 %vm119_vm1, %v1100_v24  ;;  %1066 = vmatmul.mubr.msk.bf16.gmra.mrb[4].mxu1 %vm119_vm1, %v1100_v24 }
  0x18   :  { %197 = vmatprep.mubr.bf16.mxu0 %v1112_v4  ;;  %270 = vmatprep.mubr.bf16.mxu1 %v1112_v4 }
  0x19   :  { %415 = vperm.xlu0 %1096, %v389_v27   ;;  %420 = vperm.xlu1 %1097, %v390_v28  }
  0x1d   :  { %425 = vperm.xlu0 %1096, %v391_v30   ;;  %430 = vperm.xlu1 %1097, %v392_v31  }
  0x1f   :  { %1062 = vmatmul.mubr.msk.bf16.gmra.mrb[8].mxu0 %vm119_vm1, %v1101_v29  ;;  %1067 = vmatmul.mubr.msk.bf16.gmra.mrb[8].mxu1 %vm119_vm1, %v1101_v29 }
  0x20   :  { %207 = vmatprep.mubr.bf16.mxu0 %v1112_v4  ;;  %280 = vmatprep.mubr.bf16.mxu1 %v1112_v4 }
  0x21   :  { %435 = vperm.xlu0 %1096, %v393_v32   ;;  %440 = vperm.xlu1 %1097, %v394_v33  }
  0x25   :  { %445 = vperm.xlu0 %1096, %v395_v35   ;;  %450 = vperm.xlu1 %1097, %v396_v36  }
  0x27   :  { %1063 = vmatmul.mubr.msk.bf16.gmra.mrb[12].mxu0 %vm119_vm1, %v1102_v34  ;;  %1068 = vmatmul.mubr.msk.bf16.gmra.mrb[12].mxu1 %vm119_vm1, %v1102_v34 }
  0x28   :  { %580 = vmatprep.mubr.bf16.mxu0 %v1112_v4  ;;  %693 = vmatprep.mubr.bf16.mxu1 %v1112_v4 }
  0x29   :  { %455 = vperm.xlu0 %1096, %v397_v37   ;;  %460 = vperm.xlu1 %1097, %v398_v38  }
  0x2d   :  { %465 = vperm.xlu0 %1096, %v399_v39   ;;  %470 = vperm.xlu1 %1097, %v400_v40  }
  0x31   :  { %475 = vperm.xlu0 %1096, %v401_v41   ;;  %480 = vperm.xlu1 %1097, %v402_v42  }
  0x82   :  { %v44_v43 = vpop.permute.xlu0 %43  ;;  %v54_v45 = vpop.permute.xlu1 %53 }
  0x86   :  { %v49_v44 = vpop.permute.xlu0 %48  ;;  %v59_v9 = vpop.permute.xlu1 %58 }
  0xe2   :  { %v179_v46 = vpop.f32.mrb[0].mxu0  ;;  %v252_v47 = vpop.f32.mrb[0].mxu1 }
  0xe3   :  { %v180_v48 = vadd.f32 %v179_v46, %v44_v43  ;;  %v253_v49 = vadd.f32 %v252_v47, %v44_v43  ;;  %v181_v50 = vpop.f32.mrb[1].mxu0  ;;  %v254_v51 = vpop.f32.mrb[1].mxu1 }
  0xe4   :  { %v182_v52 = vadd.f32 %v181_v50, %v44_v43  ;;  %v255_v53 = vadd.f32 %v254_v51, %v44_v43  ;;  %v183_v54 = vpop.f32.mrb[2].mxu0  ;;  %v256_v55 = vpop.f32.mrb[2].mxu1 }
  0xe5   :  { %v291_v56 = vmul.f32 0.2, %v180_v48  ;;  %v293_v57 = vmul.f32 0.2, %v253_v49  ;;  %v184_v58 = vadd.f32 %v183_v54, %v49_v44  ;;  %v257_v59 = vadd.f32 %v256_v55, %v49_v44  ;;  %v185_v60 = vpop.f32.mrb[3].mxu0  ;;  %v258_v61 = vpop.f32.mrb[3].mxu1 }
  0xe6   :  { %v292_v62 = vmul.f32 0.2, %v182_v52  ;;  %v294_v63 = vmul.f32 0.2, %v255_v53  ;;  %v186_v1 = vadd.f32 %v185_v60, %v49_v44  ;;  %v259_v2 = vadd.f32 %v258_v61, %v49_v44  ;;  %v64_v46 = vpop.permute.xlu0 %63  ;;  %v69_v47 = vpop.permute.xlu1 %68 }
  0xe7   :  { %v295_v3 = vmul.f32 0.2, %v184_v58  ;;  %v297_v6 = vmul.f32 0.2, %v257_v59  ;;  %v323_v10 = vmax.f32 %v180_v48, %v291_v56  ;;  %v325_v11 = vmax.f32 %v253_v49, %v293_v57 }
  0xe8   :  { %v296_v7 = vmul.f32 0.2, %v186_v1  ;;  %v298_v8 = vmul.f32 0.2, %v259_v2  ;;  %v324_v14 = vmax.f32 %v182_v52, %v292_v62  ;;  %v326_v15 = vmax.f32 %v255_v53, %v294_v63 }
  0xe9   :  { %v327_v12 = vmax.f32 %v184_v58, %v295_v3  ;;  %v329_v13 = vmax.f32 %v257_v59, %v297_v6 }
  0xea   :  { %v328_v16 = vmax.f32 %v186_v1, %v296_v7  ;;  %v330_v17 = vmax.f32 %v259_v2, %v298_v8  ;;  %v189_v18 = vpop.f32.mrb[4].mxu0  ;;  %v262_v19 = vpop.f32.mrb[4].mxu1 }
  0xeb   :  { %v371_v20 = vpack.c.bf16 %v327_v12, %v323_v10  ;;  %v373_v21 = vpack.c.bf16 %v329_v13, %v325_v11  ;;  %v190_v22 = vadd.f32 %v189_v18, %v54_v45  ;;  %v263_v23 = vadd.f32 %v262_v19, %v54_v45  ;;  %v191_v24 = vpop.f32.mrb[5].mxu0  ;;  %v264_v25 = vpop.f32.mrb[5].mxu1 }
  0xec   :  { %v192_v26 = vadd.f32 %v191_v24, %v54_v45  ;;  %v265_v27 = vadd.f32 %v264_v25, %v54_v45  ;;  %v193_v28 = vpop.f32.mrb[6].mxu0  ;;  %v266_v29 = vpop.f32.mrb[6].mxu1  ;;  %v372_v30 = vpack.c.bf16 %v328_v16, %v324_v14  ;;  %v374_v31 = vpack.c.bf16 %v330_v17, %v326_v15 }
  0xed   :  { %v299_v32 = vmul.f32 0.2, %v190_v22  ;;  %v301_v33 = vmul.f32 0.2, %v263_v23  ;;  %v194_v34 = vadd.f32 %v193_v28, %v59_v9  ;;  %v267_v35 = vadd.f32 %v266_v29, %v59_v9  ;;  %v195_v36 = vpop.f32.mrb[7].mxu0  ;;  %v268_v37 = vpop.f32.mrb[7].mxu1 }
  0xee   :  { %v300_v38 = vmul.f32 0.2, %v192_v26  ;;  %v302_v39 = vmul.f32 0.2, %v265_v27  ;;  %v196_v40 = vadd.f32 %v195_v36, %v59_v9  ;;  %v269_v41 = vadd.f32 %v268_v37, %v59_v9  ;;  %548 = vmatprep.subr.bf16.mxu0 %v372_v30  ;;  %661 = vmatprep.subr.bf16.mxu1 %v374_v31  ;;  %v79_v24 = vpop.permute.xlu1 %78 }
  0xef   :  { %v303_v42 = vmul.f32 0.2, %v194_v34  ;;  %v305_v43 = vmul.f32 0.2, %v267_v35  ;;  %549 = vmatpush1.bf16.msra.mxu0 %v371_v20  ;;  %662 = vmatpush1.bf16.msra.mxu1 %v373_v21  ;;  %v331_v48 = vmax.f32 %v190_v22, %v299_v32  ;;  %v333_v49 = vmax.f32 %v263_v23, %v301_v33  ;;  %v74_v23 = vpop.permute.xlu0 %73 }
  0xf0   :  { %v304_v44 = vmul.f32 0.2, %v196_v40  ;;  %v306_v45 = vmul.f32 0.2, %v269_v41  ;;  %v332_v52 = vmax.f32 %v192_v26, %v300_v38  ;;  %v334_v53 = vmax.f32 %v265_v27, %v302_v39 }
  0xf1   :  { %v335_v50 = vmax.f32 %v194_v34, %v303_v42  ;;  %v337_v51 = vmax.f32 %v267_v35, %v305_v43 }
  0xf2   :  { %v336_v54 = vmax.f32 %v196_v40, %v304_v44  ;;  %v338_v55 = vmax.f32 %v269_v41, %v306_v45  ;;  %v199_v56 = vpop.f32.mrb[8].mxu0  ;;  %v272_v57 = vpop.f32.mrb[8].mxu1 }
  0xf3   :  { %v375_v58 = vpack.c.bf16 %v335_v50, %v331_v48  ;;  %v377_v59 = vpack.c.bf16 %v337_v51, %v333_v49  ;;  %v200_v60 = vadd.f32 %v199_v56, %v64_v46  ;;  %v273_v61 = vadd.f32 %v272_v57, %v64_v46  ;;  %v201_v62 = vpop.f32.mrb[9].mxu0  ;;  %v274_v63 = vpop.f32.mrb[9].mxu1 }
  0xf4   :  { %v202_v1 = vadd.f32 %v201_v62, %v64_v46  ;;  %v275_v2 = vadd.f32 %v274_v63, %v64_v46  ;;  %v203_v3 = vpop.f32.mrb[10].mxu0  ;;  %v276_v6 = vpop.f32.mrb[10].mxu1  ;;  %v376_v7 = vpack.c.bf16 %v336_v54, %v332_v52  ;;  %v378_v8 = vpack.c.bf16 %v338_v55, %v334_v53 }
  0xf5   :  { %v307_v9 = vmul.f32 0.2, %v200_v60  ;;  %v309_v10 = vmul.f32 0.2, %v273_v61  ;;  %v204_v11 = vadd.f32 %v203_v3, %v69_v47  ;;  %v277_v12 = vadd.f32 %v276_v6, %v69_v47  ;;  %v205_v13 = vpop.f32.mrb[11].mxu0  ;;  %v278_v14 = vpop.f32.mrb[11].mxu1 }
  0xf6   :  { %v308_v15 = vmul.f32 0.2, %v202_v1  ;;  %v310_v16 = vmul.f32 0.2, %v275_v2  ;;  %v206_v17 = vadd.f32 %v205_v13, %v69_v47  ;;  %v279_v18 = vadd.f32 %v278_v14, %v69_v47  ;;  %550 = vmatprep.subr.bf16.mxu0 %v376_v7  ;;  %663 = vmatprep.subr.bf16.mxu1 %v378_v8  ;;  %v1104_v13 = vld [vmem:[%s1328_s3 + $0x8] sm:$0xff]   ;;  %v1105_v14 = vld [vmem:[%s1328_s3 + $0x10] sm:$0xff]  }
  0xf7   :  { %v311_v19 = vmul.f32 0.2, %v204_v11  ;;  %v313_v20 = vmul.f32 0.2, %v277_v12  ;;  %551 = vmatpush1.bf16.msra.mxu0 %v375_v58  ;;  %664 = vmatpush1.bf16.msra.mxu1 %v377_v59  ;;  %v339_v25 = vmax.f32 %v200_v60, %v307_v9  ;;  %v341_v26 = vmax.f32 %v273_v61, %v309_v10 }
  0xf8   :  { %v312_v21 = vmul.f32 0.2, %v206_v17  ;;  %v314_v22 = vmul.f32 0.2, %v279_v18  ;;  %v340_v29 = vmax.f32 %v202_v1, %v308_v15  ;;  %v342_v30 = vmax.f32 %v275_v2, %v310_v16  ;;  %v1106_v15 = vld [vmem:[%s1328_s3 + $0x18] sm:$0xff]   ;;  %v1107_v16 = vld [vmem:[%s1328_s3 + $0x20] sm:$0xff]  }
  0xf9   :  { %v343_v27 = vmax.f32 %v204_v11, %v311_v19  ;;  %v345_v28 = vmax.f32 %v277_v12, %v313_v20  ;;  %v1103_v12 = vld [vmem:[%s1328_s3] sm:$0xff]   ;;  %v1110_v19 = vld [vmem:[%s1328_s3 + $0x38] sm:$0xff]   ;;  %v406_v20 = vpop.permute.xlu0 %405 }
  0xfa   :  { %v344_v31 = vmax.f32 %v206_v17, %v312_v21  ;;  %v346_v32 = vmax.f32 %v279_v18, %v314_v22  ;;  %v209_v33 = vpop.f32.mrb[12].mxu0  ;;  %v282_v34 = vpop.f32.mrb[12].mxu1  ;;  %v1108_v17 = vld [vmem:[%s1328_s3 + $0x28] sm:$0xff]   ;;  %v1109_v18 = vld [vmem:[%s1328_s3 + $0x30] sm:$0xff]  }
  0xfb   :  { %v379_v35 = vpack.c.bf16 %v343_v27, %v339_v25  ;;  %v381_v36 = vpack.c.bf16 %v345_v28, %v341_v26  ;;  %v210_v37 = vadd.f32 %v209_v33, %v74_v23  ;;  %v283_v38 = vadd.f32 %v282_v34, %v74_v23  ;;  %v211_v39 = vpop.f32.mrb[13].mxu0  ;;  %v284_v40 = vpop.f32.mrb[13].mxu1 }
  0xfc   :  { %v212_v41 = vadd.f32 %v211_v39, %v74_v23  ;;  %v285_v42 = vadd.f32 %v284_v40, %v74_v23  ;;  %v213_v43 = vpop.f32.mrb[14].mxu0  ;;  %v286_v44 = vpop.f32.mrb[14].mxu1  ;;  %v380_v45 = vpack.c.bf16 %v344_v31, %v340_v29  ;;  %v382_v46 = vpack.c.bf16 %v346_v32, %v342_v30 }
  0xfd   :  { %v315_v47 = vmul.f32 0.2, %v210_v37  ;;  %v317_v48 = vmul.f32 0.2, %v283_v38  ;;  %v214_v49 = vadd.f32 %v213_v43, %v79_v24  ;;  %v287_v50 = vadd.f32 %v286_v44, %v79_v24  ;;  %v215_v51 = vpop.f32.mrb[15].mxu0  ;;  %v288_v52 = vpop.f32.mrb[15].mxu1 }
  0xfe   :  { %v316_v53 = vmul.f32 0.2, %v212_v41  ;;  %v318_v54 = vmul.f32 0.2, %v285_v42  ;;  %v216_v55 = vadd.f32 %v215_v51, %v79_v24  ;;  %v289_v56 = vadd.f32 %v288_v52, %v79_v24  ;;  %552 = vmatprep.subr.bf16.mxu0 %v380_v45  ;;  %665 = vmatprep.subr.bf16.mxu1 %v382_v46  ;;  %v411_v21 = vpop.permute.xlu1 %410  ;;  %v416_v45 = vpop.permute.xlu0 %415 }
  0xff   :  { %v319_v57 = vmul.f32 0.2, %v214_v49  ;;  %v321_v58 = vmul.f32 0.2, %v287_v50  ;;  %553 = vmatpush1.bf16.msra.mxu0 %v379_v35  ;;  %666 = vmatpush1.bf16.msra.mxu1 %v381_v36  ;;  %v347_v61 = vmax.f32 %v210_v37, %v315_v47  ;;  %v349_v62 = vmax.f32 %v283_v38, %v317_v48 }
 0x100   :  { %v320_v59 = vmul.f32 0.2, %v216_v55  ;;  %v322_v60 = vmul.f32 0.2, %v289_v56  ;;  %v348_v2 = vmax.f32 %v212_v41, %v316_v53  ;;  %v350_v3 = vmax.f32 %v285_v42, %v318_v54 }
 0x101   :  { %v351_v63 = vmax.f32 %v214_v49, %v319_v57  ;;  %v353_v1 = vmax.f32 %v287_v50, %v321_v58 }
 0x102   :  { %v352_v6 = vmax.f32 %v216_v55, %v320_v59  ;;  %v354_v7 = vmax.f32 %v289_v56, %v322_v60  ;;  %v421_v46 = vpop.permute.xlu1 %420 }
 0x103   :  { %v383_v8 = vpack.c.bf16 %v351_v63, %v347_v61  ;;  %v385_v9 = vpack.c.bf16 %v353_v1, %v349_v62 }
 0x104   :  { %v384_v10 = vpack.c.bf16 %v352_v6, %v348_v2  ;;  %v386_v11 = vpack.c.bf16 %v354_v7, %v350_v3 }
 0x106   :  { %554 = vmatprep.subr.bf16.mxu0 %v384_v10  ;;  %667 = vmatprep.subr.bf16.mxu1 %v386_v11 }
 0x107   :  { %555 = vmatpush1.bf16.msra.mxu0 %v383_v8  ;;  %668 = vmatpush1.bf16.msra.mxu1 %v385_v9 }
 0x10a   :  { %1077 = vmatmul.mubr.msk.bf16.vlgmr.msra.gmra.mrb[16].mxu0 %vm523_vm2, %v1103_v12  ;;  %1085 = vmatmul.mubr.msk.bf16.vlgmr.msra.gmra.mrb[16].mxu1 %vm523_vm2, %v1103_v12 }
 0x10b   :  { %590 = vmatprep.mubr.bf16.mxu0 %v1112_v4  ;;  %703 = vmatprep.mubr.bf16.mxu1 %v1112_v4 }
 0x112   :  { %1078 = vmatmul.mubr.msk.bf16.gmra.mrb[20].mxu0 %vm523_vm2, %v1104_v13  ;;  %1086 = vmatmul.mubr.msk.bf16.gmra.mrb[20].mxu1 %vm523_vm2, %v1104_v13 }
 0x113   :  { %600 = vmatprep.mubr.bf16.mxu0 %v1112_v4  ;;  %713 = vmatprep.mubr.bf16.mxu1 %v1112_v4 }
 0x11a   :  { %1079 = vmatmul.mubr.msk.bf16.gmra.mrb[24].mxu0 %vm523_vm2, %v1105_v14  ;;  %1087 = vmatmul.mubr.msk.bf16.gmra.mrb[24].mxu1 %vm523_vm2, %v1105_v14 }
 0x11b   :  { %610 = vmatprep.mubr.bf16.mxu0 %v1112_v4  ;;  %723 = vmatprep.mubr.bf16.mxu1 %v1112_v4 }
 0x122   :  { %1080 = vmatmul.mubr.msk.bf16.gmra.mrb[28].mxu0 %vm523_vm2, %v1106_v15  ;;  %1088 = vmatmul.mubr.msk.bf16.gmra.mrb[28].mxu1 %vm523_vm2, %v1106_v15 }
 0x123   :  { %620 = vmatprep.mubr.bf16.mxu0 %v1112_v4  ;;  %733 = vmatprep.mubr.bf16.mxu1 %v1112_v4 }
 0x12a   :  { %1081 = vmatmul.mubr.msk.bf16.gmra.mrb[32].mxu0 %vm523_vm2, %v1107_v16  ;;  %1089 = vmatmul.mubr.msk.bf16.gmra.mrb[32].mxu1 %vm523_vm2, %v1107_v16 }
 0x12b   :  { %630 = vmatprep.mubr.bf16.mxu0 %v1112_v4  ;;  %743 = vmatprep.mubr.bf16.mxu1 %v1112_v4 }
 0x132   :  { %1082 = vmatmul.mubr.msk.bf16.gmra.mrb[36].mxu0 %vm523_vm2, %v1108_v17  ;;  %1090 = vmatmul.mubr.msk.bf16.gmra.mrb[36].mxu1 %vm523_vm2, %v1108_v17 }
 0x133   :  { %640 = vmatprep.mubr.bf16.mxu0 %v1112_v4  ;;  %753 = vmatprep.mubr.bf16.mxu1 %v1112_v4 }
 0x13a   :  { %1083 = vmatmul.mubr.msk.bf16.gmra.mrb[40].mxu0 %vm523_vm2, %v1109_v18  ;;  %1091 = vmatmul.mubr.msk.bf16.gmra.mrb[40].mxu1 %vm523_vm2, %v1109_v18 }
 0x13b   :  { %650 = vmatprep.mubr.bf16.mxu0 %v1112_v4  ;;  %763 = vmatprep.mubr.bf16.mxu1 %v1112_v4 }
 0x142   :  { %1084 = vmatmul.mubr.msk.bf16.gmra.mrb[44].mxu0 %vm523_vm2, %v1110_v19  ;;  %1092 = vmatmul.mubr.msk.bf16.gmra.mrb[44].mxu1 %vm523_vm2, %v1110_v19 }
 0x143   :  { %967 = vmatprep.mubr.bf16.mxu0 %v1112_v4  ;;  %1008 = vmatprep.mubr.bf16.mxu1 %v1112_v4 }
 0x1dd   :  { %v582_v22 = vpop.f32.mrb[16].mxu0  ;;  %v695_v23 = vpop.f32.mrb[16].mxu1 }
 0x1de   :  { %v583_v24 = vadd.f32 %v582_v22, %v406_v20  ;;  %v696_v25 = vadd.f32 %v695_v23, %v406_v20  ;;  %v584_v26 = vpop.f32.mrb[17].mxu0  ;;  %v697_v27 = vpop.f32.mrb[17].mxu1 }
 0x1df   :  { %v585_v28 = vadd.f32 %v584_v26, %v406_v20  ;;  %v698_v29 = vadd.f32 %v697_v27, %v406_v20  ;;  %v586_v30 = vpop.f32.mrb[18].mxu0  ;;  %v699_v31 = vpop.f32.mrb[18].mxu1 }
 0x1e0   :  { %v774_v32 = vmul.f32 0.2, %v583_v24  ;;  %v776_v33 = vmul.f32 0.2, %v696_v25  ;;  %v587_v34 = vadd.f32 %v586_v30, %v411_v21  ;;  %v700_v35 = vadd.f32 %v699_v31, %v411_v21  ;;  %v588_v36 = vpop.f32.mrb[19].mxu0  ;;  %v701_v37 = vpop.f32.mrb[19].mxu1 }
 0x1e1   :  { %v775_v38 = vmul.f32 0.2, %v585_v28  ;;  %v777_v4 = vmul.f32 0.2, %v698_v29  ;;  %v589_v39 = vadd.f32 %v588_v36, %v411_v21  ;;  %v702_v40 = vadd.f32 %v701_v37, %v411_v21  ;;  %v426_v22 = vpop.permute.xlu0 %425  ;;  %v431_v23 = vpop.permute.xlu1 %430 }
 0x1e2   :  { %v778_v41 = vmul.f32 0.2, %v587_v34  ;;  %v780_v42 = vmul.f32 0.2, %v700_v35  ;;  %v838_v47 = vmax.f32 %v583_v24, %v774_v32  ;;  %v840_v48 = vmax.f32 %v696_v25, %v776_v33 }
 0x1e3   :  { %v779_v43 = vmul.f32 0.2, %v589_v39  ;;  %v781_v44 = vmul.f32 0.2, %v702_v40  ;;  %v839_v51 = vmax.f32 %v585_v28, %v775_v38  ;;  %v841_v52 = vmax.f32 %v698_v29, %v777_v4 }
 0x1e4   :  { %v842_v49 = vmax.f32 %v587_v34, %v778_v41  ;;  %v844_v50 = vmax.f32 %v700_v35, %v780_v42 }
 0x1e5   :  { %v843_v53 = vmax.f32 %v589_v39, %v779_v43  ;;  %v845_v54 = vmax.f32 %v702_v40, %v781_v44  ;;  %v592_v55 = vpop.f32.mrb[20].mxu0  ;;  %v705_v56 = vpop.f32.mrb[20].mxu1 }
 0x1e6   :  { %v903_v57 = vpack.c.bf16 %v842_v49, %v838_v47  ;;  %v905_v58 = vpack.c.bf16 %v844_v50, %v840_v48  ;;  %v593_v59 = vadd.f32 %v592_v55, %v416_v45  ;;  %v706_v60 = vadd.f32 %v705_v56, %v416_v45  ;;  %v594_v61 = vpop.f32.mrb[21].mxu0  ;;  %v707_v62 = vpop.f32.mrb[21].mxu1 }
 0x1e7   :  { %v595_v63 = vadd.f32 %v594_v61, %v416_v45  ;;  %v708_v1 = vadd.f32 %v707_v62, %v416_v45  ;;  %v596_v2 = vpop.f32.mrb[22].mxu0  ;;  %v709_v3 = vpop.f32.mrb[22].mxu1  ;;  %v904_v6 = vpack.c.bf16 %v843_v53, %v839_v51  ;;  %v906_v7 = vpack.c.bf16 %v845_v54, %v841_v52 }
 0x1e8   :  { %v782_v8 = vmul.f32 0.2, %v593_v59  ;;  %v784_v9 = vmul.f32 0.2, %v706_v60  ;;  %v597_v10 = vadd.f32 %v596_v2, %v421_v46  ;;  %v710_v11 = vadd.f32 %v709_v3, %v421_v46  ;;  %v598_v12 = vpop.f32.mrb[23].mxu0  ;;  %v711_v13 = vpop.f32.mrb[23].mxu1 }
 0x1e9   :  { %v783_v14 = vmul.f32 0.2, %v595_v63  ;;  %v785_v15 = vmul.f32 0.2, %v708_v1  ;;  %v599_v16 = vadd.f32 %v598_v12, %v421_v46  ;;  %v712_v17 = vadd.f32 %v711_v13, %v421_v46  ;;  %935 = vmatprep.subr.bf16.mxu0 %v904_v6  ;;  %976 = vmatprep.subr.bf16.mxu1 %v906_v7 }
 0x1ea   :  { %v786_v18 = vmul.f32 0.2, %v597_v10  ;;  %v788_v19 = vmul.f32 0.2, %v710_v11  ;;  %936 = vmatpush1.bf16.msra.mxu0 %v903_v57  ;;  %977 = vmatpush1.bf16.msra.mxu1 %v905_v58  ;;  %v846_v24 = vmax.f32 %v593_v59, %v782_v8  ;;  %v848_v25 = vmax.f32 %v706_v60, %v784_v9  ;;  %v436_v59 = vpop.permute.xlu0 %435  ;;  %v441_v60 = vpop.permute.xlu1 %440 }
 0x1eb   :  { %v787_v20 = vmul.f32 0.2, %v599_v16  ;;  %v789_v21 = vmul.f32 0.2, %v712_v17  ;;  %v847_v28 = vmax.f32 %v595_v63, %v783_v14  ;;  %v849_v29 = vmax.f32 %v708_v1, %v785_v15 }
 0x1ec   :  { %v850_v26 = vmax.f32 %v597_v10, %v786_v18  ;;  %v852_v27 = vmax.f32 %v710_v11, %v788_v19 }
 0x1ed   :  { %v851_v30 = vmax.f32 %v599_v16, %v787_v20  ;;  %v853_v31 = vmax.f32 %v712_v17, %v789_v21  ;;  %v602_v32 = vpop.f32.mrb[24].mxu0  ;;  %v715_v33 = vpop.f32.mrb[24].mxu1 }
 0x1ee   :  { %v907_v34 = vpack.c.bf16 %v850_v26, %v846_v24  ;;  %v909_v35 = vpack.c.bf16 %v852_v27, %v848_v25  ;;  %v603_v36 = vadd.f32 %v602_v32, %v426_v22  ;;  %v716_v37 = vadd.f32 %v715_v33, %v426_v22  ;;  %v604_v38 = vpop.f32.mrb[25].mxu0  ;;  %v717_v4 = vpop.f32.mrb[25].mxu1 }
 0x1ef   :  { %v605_v39 = vadd.f32 %v604_v38, %v426_v22  ;;  %v718_v40 = vadd.f32 %v717_v4, %v426_v22  ;;  %v606_v41 = vpop.f32.mrb[26].mxu0  ;;  %v719_v42 = vpop.f32.mrb[26].mxu1  ;;  %v908_v43 = vpack.c.bf16 %v851_v30, %v847_v28  ;;  %v910_v44 = vpack.c.bf16 %v853_v31, %v849_v29 }
 0x1f0   :  { %v790_v45 = vmul.f32 0.2, %v603_v36  ;;  %v792_v46 = vmul.f32 0.2, %v716_v37  ;;  %v607_v47 = vadd.f32 %v606_v41, %v431_v23  ;;  %v720_v48 = vadd.f32 %v719_v42, %v431_v23  ;;  %v608_v49 = vpop.f32.mrb[27].mxu0  ;;  %v721_v50 = vpop.f32.mrb[27].mxu1 }
 0x1f1   :  { %v791_v51 = vmul.f32 0.2, %v605_v39  ;;  %v793_v52 = vmul.f32 0.2, %v718_v40  ;;  %v609_v53 = vadd.f32 %v608_v49, %v431_v23  ;;  %v722_v54 = vadd.f32 %v721_v50, %v431_v23  ;;  %937 = vmatprep.subr.bf16.mxu0 %v908_v43  ;;  %978 = vmatprep.subr.bf16.mxu1 %v910_v44 }
 0x1f2   :  { %v794_v55 = vmul.f32 0.2, %v607_v47  ;;  %v796_v56 = vmul.f32 0.2, %v720_v48  ;;  %938 = vmatpush1.bf16.msra.mxu0 %v907_v34  ;;  %979 = vmatpush1.bf16.msra.mxu1 %v909_v35  ;;  %v854_v61 = vmax.f32 %v603_v36, %v790_v45  ;;  %v856_v62 = vmax.f32 %v716_v37, %v792_v46  ;;  %v446_v36 = vpop.permute.xlu0 %445  ;;  %v451_v37 = vpop.permute.xlu1 %450 }
 0x1f3   :  { %v795_v57 = vmul.f32 0.2, %v609_v53  ;;  %v797_v58 = vmul.f32 0.2, %v722_v54  ;;  %v855_v2 = vmax.f32 %v605_v39, %v791_v51  ;;  %v857_v3 = vmax.f32 %v718_v40, %v793_v52 }
 0x1f4   :  { %v858_v63 = vmax.f32 %v607_v47, %v794_v55  ;;  %v860_v1 = vmax.f32 %v720_v48, %v796_v56 }
 0x1f5   :  { %v859_v6 = vmax.f32 %v609_v53, %v795_v57  ;;  %v861_v7 = vmax.f32 %v722_v54, %v797_v58  ;;  %v612_v8 = vpop.f32.mrb[28].mxu0  ;;  %v725_v9 = vpop.f32.mrb[28].mxu1 }
 0x1f6   :  { %v911_v10 = vpack.c.bf16 %v858_v63, %v854_v61  ;;  %v913_v11 = vpack.c.bf16 %v860_v1, %v856_v62  ;;  %v613_v12 = vadd.f32 %v612_v8, %v436_v59  ;;  %v726_v13 = vadd.f32 %v725_v9, %v436_v59  ;;  %v614_v14 = vpop.f32.mrb[29].mxu0  ;;  %v727_v15 = vpop.f32.mrb[29].mxu1 }
 0x1f7   :  { %v615_v16 = vadd.f32 %v614_v14, %v436_v59  ;;  %v728_v17 = vadd.f32 %v727_v15, %v436_v59  ;;  %v616_v18 = vpop.f32.mrb[30].mxu0  ;;  %v729_v19 = vpop.f32.mrb[30].mxu1  ;;  %v912_v20 = vpack.c.bf16 %v859_v6, %v855_v2  ;;  %v914_v21 = vpack.c.bf16 %v861_v7, %v857_v3 }
 0x1f8   :  { %v798_v22 = vmul.f32 0.2, %v613_v12  ;;  %v800_v23 = vmul.f32 0.2, %v726_v13  ;;  %v617_v24 = vadd.f32 %v616_v18, %v441_v60  ;;  %v730_v25 = vadd.f32 %v729_v19, %v441_v60  ;;  %v618_v26 = vpop.f32.mrb[31].mxu0  ;;  %v731_v27 = vpop.f32.mrb[31].mxu1 }
 0x1f9   :  { %v799_v28 = vmul.f32 0.2, %v615_v16  ;;  %v801_v29 = vmul.f32 0.2, %v728_v17  ;;  %v619_v30 = vadd.f32 %v618_v26, %v441_v60  ;;  %v732_v31 = vadd.f32 %v731_v27, %v441_v60  ;;  %939 = vmatprep.subr.bf16.mxu0 %v912_v20  ;;  %980 = vmatprep.subr.bf16.mxu1 %v914_v21 }
 0x1fa   :  { %v802_v32 = vmul.f32 0.2, %v617_v24  ;;  %v804_v33 = vmul.f32 0.2, %v730_v25  ;;  %940 = vmatpush1.bf16.msra.mxu0 %v911_v10  ;;  %981 = vmatpush1.bf16.msra.mxu1 %v913_v11  ;;  %v862_v38 = vmax.f32 %v613_v12, %v798_v22  ;;  %v864_v4 = vmax.f32 %v726_v13, %v800_v23  ;;  %v456_v12 = vpop.permute.xlu0 %455  ;;  %v461_v13 = vpop.permute.xlu1 %460 }
 0x1fb   :  { %v803_v34 = vmul.f32 0.2, %v619_v30  ;;  %v805_v35 = vmul.f32 0.2, %v732_v31  ;;  %v863_v41 = vmax.f32 %v615_v16, %v799_v28  ;;  %v865_v42 = vmax.f32 %v728_v17, %v801_v29 }
 0x1fc   :  { %v866_v39 = vmax.f32 %v617_v24, %v802_v32  ;;  %v868_v40 = vmax.f32 %v730_v25, %v804_v33 }
 0x1fd   :  { %v867_v43 = vmax.f32 %v619_v30, %v803_v34  ;;  %v869_v44 = vmax.f32 %v732_v31, %v805_v35  ;;  %v622_v45 = vpop.f32.mrb[32].mxu0  ;;  %v735_v46 = vpop.f32.mrb[32].mxu1 }
 0x1fe   :  { %v915_v47 = vpack.c.bf16 %v866_v39, %v862_v38  ;;  %v917_v48 = vpack.c.bf16 %v868_v40, %v864_v4  ;;  %v623_v49 = vadd.f32 %v622_v45, %v446_v36  ;;  %v736_v50 = vadd.f32 %v735_v46, %v446_v36  ;;  %v624_v51 = vpop.f32.mrb[33].mxu0  ;;  %v737_v52 = vpop.f32.mrb[33].mxu1 }
 0x1ff   :  { %v625_v53 = vadd.f32 %v624_v51, %v446_v36  ;;  %v738_v54 = vadd.f32 %v737_v52, %v446_v36  ;;  %v626_v55 = vpop.f32.mrb[34].mxu0  ;;  %v739_v56 = vpop.f32.mrb[34].mxu1  ;;  %v916_v57 = vpack.c.bf16 %v867_v43, %v863_v41  ;;  %v918_v58 = vpack.c.bf16 %v869_v44, %v865_v42 }
 0x200   :  { %v806_v59 = vmul.f32 0.2, %v623_v49  ;;  %v808_v60 = vmul.f32 0.2, %v736_v50  ;;  %v627_v61 = vadd.f32 %v626_v55, %v451_v37  ;;  %v740_v62 = vadd.f32 %v739_v56, %v451_v37  ;;  %v628_v63 = vpop.f32.mrb[35].mxu0  ;;  %v741_v1 = vpop.f32.mrb[35].mxu1 }
 0x201   :  { %v807_v2 = vmul.f32 0.2, %v625_v53  ;;  %v809_v3 = vmul.f32 0.2, %v738_v54  ;;  %v629_v6 = vadd.f32 %v628_v63, %v451_v37  ;;  %v742_v7 = vadd.f32 %v741_v1, %v451_v37  ;;  %941 = vmatprep.subr.bf16.mxu0 %v916_v57  ;;  %982 = vmatprep.subr.bf16.mxu1 %v918_v58 }
 0x202   :  { %v810_v8 = vmul.f32 0.2, %v627_v61  ;;  %v812_v9 = vmul.f32 0.2, %v740_v62  ;;  %942 = vmatpush1.bf16.msra.mxu0 %v915_v47  ;;  %983 = vmatpush1.bf16.msra.mxu1 %v917_v48  ;;  %v870_v14 = vmax.f32 %v623_v49, %v806_v59  ;;  %v872_v15 = vmax.f32 %v736_v50, %v808_v60  ;;  %v466_v49 = vpop.permute.xlu0 %465  ;;  %v471_v50 = vpop.permute.xlu1 %470 }
 0x203   :  { %v811_v10 = vmul.f32 0.2, %v629_v6  ;;  %v813_v11 = vmul.f32 0.2, %v742_v7  ;;  %v871_v18 = vmax.f32 %v625_v53, %v807_v2  ;;  %v873_v19 = vmax.f32 %v738_v54, %v809_v3 }
 0x204   :  { %v874_v16 = vmax.f32 %v627_v61, %v810_v8  ;;  %v876_v17 = vmax.f32 %v740_v62, %v812_v9 }
 0x205   :  { %v875_v20 = vmax.f32 %v629_v6, %v811_v10  ;;  %v877_v21 = vmax.f32 %v742_v7, %v813_v11  ;;  %v632_v22 = vpop.f32.mrb[36].mxu0  ;;  %v745_v23 = vpop.f32.mrb[36].mxu1 }
 0x206   :  { %v919_v24 = vpack.c.bf16 %v874_v16, %v870_v14  ;;  %v921_v25 = vpack.c.bf16 %v876_v17, %v872_v15  ;;  %v633_v26 = vadd.f32 %v632_v22, %v456_v12  ;;  %v746_v27 = vadd.f32 %v745_v23, %v456_v12  ;;  %v634_v28 = vpop.f32.mrb[37].mxu0  ;;  %v747_v29 = vpop.f32.mrb[37].mxu1 }
 0x207   :  { %v635_v30 = vadd.f32 %v634_v28, %v456_v12  ;;  %v748_v31 = vadd.f32 %v747_v29, %v456_v12  ;;  %v636_v32 = vpop.f32.mrb[38].mxu0  ;;  %v749_v33 = vpop.f32.mrb[38].mxu1  ;;  %v920_v34 = vpack.c.bf16 %v875_v20, %v871_v18  ;;  %v922_v35 = vpack.c.bf16 %v877_v21, %v873_v19 }
 0x208   :  { %v814_v36 = vmul.f32 0.2, %v633_v26  ;;  %v816_v37 = vmul.f32 0.2, %v746_v27  ;;  %v637_v38 = vadd.f32 %v636_v32, %v461_v13  ;;  %v750_v4 = vadd.f32 %v749_v33, %v461_v13  ;;  %v638_v39 = vpop.f32.mrb[39].mxu0  ;;  %v751_v40 = vpop.f32.mrb[39].mxu1 }
 0x209   :  { %v815_v41 = vmul.f32 0.2, %v635_v30  ;;  %v817_v42 = vmul.f32 0.2, %v748_v31  ;;  %v639_v43 = vadd.f32 %v638_v39, %v461_v13  ;;  %v752_v44 = vadd.f32 %v751_v40, %v461_v13  ;;  %943 = vmatprep.subr.bf16.mxu0 %v920_v34  ;;  %984 = vmatprep.subr.bf16.mxu1 %v922_v35 }
 0x20a   :  { %v818_v45 = vmul.f32 0.2, %v637_v38  ;;  %v820_v46 = vmul.f32 0.2, %v750_v4  ;;  %944 = vmatpush1.bf16.msra.mxu0 %v919_v24  ;;  %985 = vmatpush1.bf16.msra.mxu1 %v921_v25  ;;  %v878_v51 = vmax.f32 %v633_v26, %v814_v36  ;;  %v880_v52 = vmax.f32 %v746_v27, %v816_v37  ;;  %v476_v26 = vpop.permute.xlu0 %475  ;;  %v481_v27 = vpop.permute.xlu1 %480 }
 0x20b   :  { %v819_v47 = vmul.f32 0.2, %v639_v43  ;;  %v821_v48 = vmul.f32 0.2, %v752_v44  ;;  %v879_v55 = vmax.f32 %v635_v30, %v815_v41  ;;  %v881_v56 = vmax.f32 %v748_v31, %v817_v42 }
 0x20c   :  { %v882_v53 = vmax.f32 %v637_v38, %v818_v45  ;;  %v884_v54 = vmax.f32 %v750_v4, %v820_v46 }
 0x20d   :  { %v883_v57 = vmax.f32 %v639_v43, %v819_v47  ;;  %v885_v58 = vmax.f32 %v752_v44, %v821_v48  ;;  %v642_v59 = vpop.f32.mrb[40].mxu0  ;;  %v755_v60 = vpop.f32.mrb[40].mxu1 }
 0x20e   :  { %v923_v61 = vpack.c.bf16 %v882_v53, %v878_v51  ;;  %v925_v62 = vpack.c.bf16 %v884_v54, %v880_v52  ;;  %v643_v63 = vadd.f32 %v642_v59, %v466_v49  ;;  %v756_v1 = vadd.f32 %v755_v60, %v466_v49  ;;  %v644_v2 = vpop.f32.mrb[41].mxu0  ;;  %v757_v3 = vpop.f32.mrb[41].mxu1 }
 0x20f   :  { %v645_v6 = vadd.f32 %v644_v2, %v466_v49  ;;  %v758_v7 = vadd.f32 %v757_v3, %v466_v49  ;;  %v646_v8 = vpop.f32.mrb[42].mxu0  ;;  %v759_v9 = vpop.f32.mrb[42].mxu1  ;;  %v924_v10 = vpack.c.bf16 %v883_v57, %v879_v55  ;;  %v926_v11 = vpack.c.bf16 %v885_v58, %v881_v56 }
 0x210   :  { %v822_v12 = vmul.f32 0.2, %v643_v63  ;;  %v824_v13 = vmul.f32 0.2, %v756_v1  ;;  %v647_v14 = vadd.f32 %v646_v8, %v471_v50  ;;  %v760_v15 = vadd.f32 %v759_v9, %v471_v50  ;;  %v648_v16 = vpop.f32.mrb[43].mxu0  ;;  %v761_v17 = vpop.f32.mrb[43].mxu1 }
 0x211   :  { %v823_v18 = vmul.f32 0.2, %v645_v6  ;;  %v825_v19 = vmul.f32 0.2, %v758_v7  ;;  %v649_v20 = vadd.f32 %v648_v16, %v471_v50  ;;  %v762_v21 = vadd.f32 %v761_v17, %v471_v50  ;;  %945 = vmatprep.subr.bf16.mxu0 %v924_v10  ;;  %986 = vmatprep.subr.bf16.mxu1 %v926_v11 }
 0x212   :  { %v826_v22 = vmul.f32 0.2, %v647_v14  ;;  %v828_v23 = vmul.f32 0.2, %v760_v15  ;;  %946 = vmatpush1.bf16.msra.mxu0 %v923_v61  ;;  %987 = vmatpush1.bf16.msra.mxu1 %v925_v62  ;;  %v886_v28 = vmax.f32 %v643_v63, %v822_v12  ;;  %v888_v29 = vmax.f32 %v756_v1, %v824_v13 }
 0x213   :  { %v827_v24 = vmul.f32 0.2, %v649_v20  ;;  %v829_v25 = vmul.f32 0.2, %v762_v21  ;;  %v887_v32 = vmax.f32 %v645_v6, %v823_v18  ;;  %v889_v33 = vmax.f32 %v758_v7, %v825_v19 }
 0x214   :  { %v890_v30 = vmax.f32 %v647_v14, %v826_v22  ;;  %v892_v31 = vmax.f32 %v760_v15, %v828_v23  ;;  %v902_v14 = vld [vmem:[%s1329_s5] sm:$0x1]  ;;  %v1113_v15 = vmov 1966171168  }
 0x215   :  { %v891_v34 = vmax.f32 %v649_v20, %v827_v24  ;;  %v893_v35 = vmax.f32 %v762_v21, %v829_v25  ;;  %v652_v36 = vpop.f32.mrb[44].mxu0  ;;  %v765_v37 = vpop.f32.mrb[44].mxu1  ;;  %v1024_v16 = vunpack.c.l.s4 %v1113_v15 }
 0x216   :  { %v927_v38 = vpack.c.bf16 %v890_v30, %v886_v28  ;;  %v929_v4 = vpack.c.bf16 %v892_v31, %v888_v29  ;;  %v653_v39 = vadd.f32 %v652_v36, %v476_v26  ;;  %v766_v40 = vadd.f32 %v765_v37, %v476_v26  ;;  %v654_v41 = vpop.f32.mrb[45].mxu0  ;;  %v767_v42 = vpop.f32.mrb[45].mxu1 }
 0x217   :  { %v655_v43 = vadd.f32 %v654_v41, %v476_v26  ;;  %v768_v44 = vadd.f32 %v767_v42, %v476_v26  ;;  %v656_v45 = vpop.f32.mrb[46].mxu0  ;;  %v769_v46 = vpop.f32.mrb[46].mxu1  ;;  %v928_v47 = vpack.c.bf16 %v891_v34, %v887_v32  ;;  %v930_v48 = vpack.c.bf16 %v893_v35, %v889_v33 }
 0x218   :  { %v830_v49 = vmul.f32 0.2, %v653_v39  ;;  %v832_v50 = vmul.f32 0.2, %v766_v40  ;;  %v657_v51 = vadd.f32 %v656_v45, %v481_v27  ;;  %v770_v52 = vadd.f32 %v769_v46, %v481_v27  ;;  %v658_v53 = vpop.f32.mrb[47].mxu0  ;;  %v771_v54 = vpop.f32.mrb[47].mxu1 }
 0x219   :  { %v831_v55 = vmul.f32 0.2, %v655_v43  ;;  %v833_v56 = vmul.f32 0.2, %v768_v44  ;;  %v659_v57 = vadd.f32 %v658_v53, %v481_v27  ;;  %v772_v58 = vadd.f32 %v771_v54, %v481_v27  ;;  %947 = vmatprep.subr.bf16.mxu0 %v928_v47  ;;  %988 = vmatprep.subr.bf16.mxu1 %v930_v48 }
 0x21a   :  { %v834_v59 = vmul.f32 0.2, %v657_v51  ;;  %v836_v60 = vmul.f32 0.2, %v770_v52  ;;  %948 = vmatpush1.bf16.msra.mxu0 %v927_v38  ;;  %989 = vmatpush1.bf16.msra.mxu1 %v929_v4  ;;  %v894_v63 = vmax.f32 %v653_v39, %v830_v49  ;;  %v896_v1 = vmax.f32 %v766_v40, %v832_v50 }
 0x21b   :  { %v835_v61 = vmul.f32 0.2, %v659_v57  ;;  %v837_v62 = vmul.f32 0.2, %v772_v58  ;;  %v895_v6 = vmax.f32 %v655_v43, %v831_v55  ;;  %v897_v7 = vmax.f32 %v768_v44, %v833_v56 }
 0x21c   :  { %v898_v2 = vmax.f32 %v657_v51, %v834_v59  ;;  %v900_v3 = vmax.f32 %v770_v52, %v836_v60  ;;  %v1025_v17 = vunpack.c.0.s8 %v1024_v16 }
 0x21d   :  { %v899_v8 = vmax.f32 %v659_v57, %v835_v61  ;;  %v901_v9 = vmax.f32 %v772_v58, %v837_v62 }
 0x21e   :  { %v931_v10 = vpack.c.bf16 %v898_v2, %v894_v63  ;;  %v933_v11 = vpack.c.bf16 %v900_v3, %v896_v1  ;;  %v1028_v20 = vsub.s32 %v1025_v17, %v1155_v5 }
 0x21f   :  { %v932_v12 = vpack.c.bf16 %v899_v8, %v895_v6  ;;  %v934_v13 = vpack.c.bf16 %v901_v9, %v897_v7 }
 0x221   :  { %949 = vmatprep.subr.bf16.mxu0 %v932_v12  ;;  %990 = vmatprep.subr.bf16.mxu1 %v934_v13 }
 0x222   :  { %950 = vmatpush1.bf16.msra.mxu0 %v931_v10  ;;  %991 = vmatpush1.bf16.msra.mxu1 %v933_v11 }
 0x225   :  { %968 = vmatmul.mubr.bf16.vlgmr.msra.gmra.mrb[48].mxu0 %v902_v14  ;;  %1009 = vmatmul.mubr.bf16.vlgmr.msra.gmra.mrb[48].mxu1 %v902_v14 }
 0x2f8   :  { %v969_v18 = vpop.f32.mrb[48].mxu0  ;;  %v1010_v19 = vpop.f32.mrb[48].mxu1 }
 0x2f9   :  { %v971_v21 = vpop.f32.mrb[49].mxu0  ;;  %v1012_v22 = vpop.f32.mrb[49].mxu1 }
 0x2fa   :  { %v1021_v23 = vcombine.low %v969_v18, %v971_v21  ;;  %v1022_v24 = vcombine.low %v1010_v19, %v1012_v22  ;;  %v973_v25 = vpop.f32.mrb[50].mxu0  ;;  %v1014_v26 = vpop.f32.mrb[50].mxu1 }
 0x2fb   :  { %v974_v27 = vpop.f32.mrb[51].mxu0  ;;  %v1015_v28 = vpop.f32.mrb[51].mxu1 }
 0x2fc   :  { %v1029_v29 = vrot.slane %v1021_v23, %v1028_v20  ;;  %v1036_v30 = vrot.slane %v1022_v24, %v1028_v20 }
 0x2fe   :  { %v1037_v31 = vcombine.low %v1029_v29, %v1036_v30 }
 0x300   :  { %v1044_v32 = vrot.slane %v1037_v31, %v1028_v20 }
 0x302   :  { %1050 = vst.msk [vmem:[%s1330_s6] sm:$0xf] %vm1048_vm3, %v1044_v32 }

// kernel: pixel_discriminator_forward.2
= control target key start
LH: loop header
LB: loop body
LE: loop exit
PB: predicated region body
PF: predicated region fallthrough
CT: control target
= control target key end

     0   :  { %v161_v0 = vlaneseq  ;;  %v1124_v2 = vmov 1983009808   ;;  %v1125_v4 = vmov 0   ;;  %vm187_vm0 = vcmask 1041408   ;;  %s1654_s0 = inlined_call_operand.vmem [shape: bf16[4,512], index: 0, kind: input, shape index: {}]   ;;  %s1655_s1 = inlined_call_operand.vmem [shape: bf16[64,4], index: 1, kind: input, shape index: {}]   ;;  %s1656_s2 = inlined_call_operand.vmem [shape: f32[64,1], index: 2, kind: input, shape index: {}]   ;;  %s1657_s3 = inlined_call_operand.vmem [shape: bf16[128,64], index: 3, kind: input, shape index: {}]   ;;  %s1658_s4 = inlined_call_operand.vmem [shape: f32[1,128,1], index: 4, kind: output, shape index: {0}]   ;;  %s1659_s5 = inlined_call_operand.vmem [shape: f32[1,128,1], index: 5, kind: output, shape index: {1}]  }
   0x1   :  { %v87_v1 = vld [vmem:[%s1654_s0] sm:$0xff]  ;;  %v159_v3 = vunpack.c.l.s4 %v1124_v2  ;;  %232 = vmatprep.mubr.bf16.mxu0 %v1125_v4  ;;  %305 = vmatprep.mubr.bf16.mxu1 %v1125_v4  ;;  %v90_v10 = vld [vmem:[%s1656_s2 + $0x10] sm:$0xff]  ;;  %v89_v13 = vld [vmem:[%s1656_s2 + $0x8] sm:$0xff]  ;;  %vm174_vm1 = vcmask 31744   ;;  %vm482_vm2 = vcmask 523264   ;;  %vm46_vm3 = vcmask 7168  }
   0x2   :  { %v162_v5 = vshrl.u32 %v161_v0, 7  ;;  %1109 = vset.pattern.permute.xlu0 %v1125_v4  ;;  %1110 = vset.pattern.permute.xlu1 %v1125_v4  ;;  %v157_v7 = vcombine.high %v87_v1, %v87_v1  ;;  %v88_v9 = vld [vmem:[%s1656_s2] sm:$0xff]  ;;  %v91_v18 = vld [vmem:[%s1656_s2 + $0x18] sm:$0xff]  ;;  %v93_v21 = vld [vmem:[%s1656_s2 + $0x28] sm:$0xff] }
   0x3   :  { %v160_v6 = vunpack.c.0.s8 %v159_v3  ;;  %98 = vperm.xlu0 %1109, %v88_v9   ;;  %108 = vperm.xlu1 %1110, %v90_v10   ;;  %v1112_v19 = vld [vmem:[%s1655_s1] sm:$0xff]   ;;  %v94_v22 = vld [vmem:[%s1656_s2 + $0x30] sm:$0xff]  ;;  %v95_v23 = vld [vmem:[%s1656_s2 + $0x38] sm:$0xff] }
   0x4   :  { %v92_v20 = vld [vmem:[%s1656_s2 + $0x20] sm:$0xff]  ;;  %v1113_v24 = vld [vmem:[%s1655_s1 + $0x8] sm:$0xff]   ;;  %v1114_v25 = vld [vmem:[%s1655_s1 + $0x10] sm:$0xff]  }
   0x5   :  { %v163_v8 = vsub.s32 %v160_v6, %v162_v5  ;;  %v1115_v26 = vld [vmem:[%s1655_s1 + $0x18] sm:$0xff]  }
   0x7   :  { %v164_v11 = vrot.slane %v87_v1, %v163_v8  ;;  %v171_v12 = vrot.slane %v157_v7, %v163_v8  ;;  %103 = vperm.xlu0 %1109, %v89_v13   ;;  %113 = vperm.xlu1 %1110, %v91_v18  }
   0x9   :  { %v172_v14 = vcombine.high %v164_v11, %v164_v11  ;;  %v173_v15 = vcombine.high %v171_v12, %v171_v12  ;;  %v189_v16 = vsel %vm187_vm0, %v164_v11, 0  ;;  %v195_v17 = vsel %vm187_vm0, %v171_v12, 0 }
   0xb   :  { %1072 = vmatprep.subr.msk.bf16.mxu0 %vm187_vm0, %v172_v14  ;;  %1077 = vmatprep.subr.msk.bf16.mxu1 %vm187_vm0, %v173_v15 }
   0xc   :  { %201 = vmatpush1.bf16.msra.mxu0 %v189_v16  ;;  %274 = vmatpush1.bf16.msra.mxu1 %v195_v17 }
   0xd   :  { %118 = vperm.xlu0 %1109, %v92_v20   ;;  %123 = vperm.xlu1 %1110, %v93_v21  }
   0xf   :  { %1073 = vmatmul.mubr.msk.bf16.vlgmr.msra.gmra.mrb[0].mxu0 %vm174_vm1, %v1112_v19  ;;  %1078 = vmatmul.mubr.msk.bf16.vlgmr.msra.gmra.mrb[0].mxu1 %vm174_vm1, %v1112_v19 }
  0x10   :  { %242 = vmatprep.mubr.bf16.mxu0 %v1125_v4  ;;  %315 = vmatprep.mubr.bf16.mxu1 %v1125_v4 }
  0x11   :  { %128 = vperm.xlu0 %1109, %v94_v22   ;;  %133 = vperm.xlu1 %1110, %v95_v23  }
  0x17   :  { %1074 = vmatmul.mubr.msk.bf16.gmra.mrb[4].mxu0 %vm174_vm1, %v1113_v24  ;;  %1079 = vmatmul.mubr.msk.bf16.gmra.mrb[4].mxu1 %vm174_vm1, %v1113_v24 }
  0x18   :  { %252 = vmatprep.mubr.bf16.mxu0 %v1125_v4  ;;  %325 = vmatprep.mubr.bf16.mxu1 %v1125_v4 }
  0x1f   :  { %1075 = vmatmul.mubr.msk.bf16.gmra.mrb[8].mxu0 %vm174_vm1, %v1114_v25  ;;  %1080 = vmatmul.mubr.msk.bf16.gmra.mrb[8].mxu1 %vm174_vm1, %v1114_v25 }
  0x20   :  { %262 = vmatprep.mubr.bf16.mxu0 %v1125_v4  ;;  %335 = vmatprep.mubr.bf16.mxu1 %v1125_v4 }
  0x27   :  { %1076 = vmatmul.mubr.msk.bf16.gmra.mrb[12].mxu0 %vm174_vm1, %v1115_v26  ;;  %1081 = vmatmul.mubr.msk.bf16.gmra.mrb[12].mxu1 %vm174_vm1, %v1115_v26 }
  0x28   :  { %539 = vmatprep.mubr.bf16.mxu0 %v1125_v4  ;;  %652 = vmatprep.mubr.bf16.mxu1 %v1125_v4 }
  0x82   :  { %v99_v27 = vpop.permute.xlu0 %98  ;;  %v109_v29 = vpop.permute.xlu1 %108 }
  0x86   :  { %v104_v28 = vpop.permute.xlu0 %103  ;;  %v114_v55 = vpop.permute.xlu1 %113 }
  0xe2   :  { %v234_v30 = vpop.f32.mrb[0].mxu0  ;;  %v307_v31 = vpop.f32.mrb[0].mxu1 }
  0xe3   :  { %v235_v32 = vadd.f32 %v234_v30, %v99_v27  ;;  %v308_v33 = vadd.f32 %v307_v31, %v99_v27  ;;  %v236_v34 = vpop.f32.mrb[1].mxu0  ;;  %v309_v35 = vpop.f32.mrb[1].mxu1 }
  0xe4   :  { %v237_v36 = vadd.f32 %v236_v34, %v99_v27  ;;  %v310_v37 = vadd.f32 %v309_v35, %v99_v27  ;;  %v238_v38 = vpop.f32.mrb[2].mxu0  ;;  %v311_v39 = vpop.f32.mrb[2].mxu1 }
  0xe5   :  { %v346_v40 = vmul.f32 0.2, %v235_v32  ;;  %v348_v41 = vmul.f32 0.2, %v308_v33  ;;  %v239_v42 = vadd.f32 %v238_v38, %v104_v28  ;;  %v312_v43 = vadd.f32 %v311_v39, %v104_v28  ;;  %v240_v44 = vpop.f32.mrb[3].mxu0  ;;  %v313_v45 = vpop.f32.mrb[3].mxu1 }
  0xe6   :  { %v347_v46 = vmul.f32 0.2, %v237_v36  ;;  %v349_v47 = vmul.f32 0.2, %v310_v37  ;;  %v241_v48 = vadd.f32 %v240_v44, %v104_v28  ;;  %v314_v49 = vadd.f32 %v313_v45, %v104_v28  ;;  %v124_v30 = vpop.permute.xlu1 %123 }
  0xe7   :  { %v380_v50 = vmax.f32 %v308_v33, %v348_v41  ;;  %v350_v51 = vmul.f32 0.2, %v239_v42  ;;  %v352_v52 = vmul.f32 0.2, %v312_v43  ;;  %v378_v56 = vmax.f32 %v235_v32, %v346_v40 }
  0xe8   :  { %v351_v53 = vmul.f32 0.2, %v241_v48  ;;  %v353_v54 = vmul.f32 0.2, %v314_v49  ;;  %v379_v59 = vmax.f32 %v237_v36, %v347_v46  ;;  %v381_v60 = vmax.f32 %v310_v37, %v349_v47 }
  0xe9   :  { %v382_v57 = vmax.f32 %v239_v42, %v350_v51  ;;  %v384_v58 = vmax.f32 %v312_v43, %v352_v52 }
  0xea   :  { %v383_v61 = vmax.f32 %v241_v48, %v351_v53  ;;  %v385_v62 = vmax.f32 %v314_v49, %v353_v54  ;;  %v244_v63 = vpop.f32.mrb[4].mxu0  ;;  %v317_v0 = vpop.f32.mrb[4].mxu1 }
  0xeb   :  { %v426_v1 = vpack.c.bf16 %v382_v57, %v378_v56  ;;  %v428_v2 = vpack.c.bf16 %v384_v58, %v380_v50  ;;  %v245_v3 = vadd.f32 %v244_v63, %v109_v29  ;;  %v318_v5 = vadd.f32 %v317_v0, %v109_v29  ;;  %v246_v6 = vpop.f32.mrb[5].mxu0  ;;  %v319_v7 = vpop.f32.mrb[5].mxu1 }
  0xec   :  { %v247_v8 = vadd.f32 %v246_v6, %v109_v29  ;;  %v320_v9 = vadd.f32 %v319_v7, %v109_v29  ;;  %v248_v10 = vpop.f32.mrb[6].mxu0  ;;  %v321_v11 = vpop.f32.mrb[6].mxu1  ;;  %v427_v12 = vpack.c.bf16 %v383_v61, %v379_v59  ;;  %v429_v13 = vpack.c.bf16 %v385_v62, %v381_v60 }
  0xed   :  { %v354_v14 = vmul.f32 0.2, %v245_v3  ;;  %v356_v15 = vmul.f32 0.2, %v318_v5  ;;  %v249_v16 = vadd.f32 %v248_v10, %v114_v55  ;;  %v322_v17 = vadd.f32 %v321_v11, %v114_v55  ;;  %v250_v18 = vpop.f32.mrb[7].mxu0  ;;  %v323_v19 = vpop.f32.mrb[7].mxu1 }
  0xee   :  { %v355_v20 = vmul.f32 0.2, %v247_v8  ;;  %v357_v21 = vmul.f32 0.2, %v320_v9  ;;  %v251_v22 = vadd.f32 %v250_v18, %v114_v55  ;;  %v324_v23 = vadd.f32 %v323_v19, %v114_v55  ;;  %507 = vmatprep.subr.bf16.mxu0 %v427_v12  ;;  %620 = vmatprep.subr.bf16.mxu1 %v429_v13  ;;  %v119_v29 = vpop.permute.xlu0 %118 }
  0xef   :  { %v388_v24 = vmax.f32 %v318_v5, %v356_v15  ;;  %v358_v25 = vmul.f32 0.2, %v249_v16  ;;  %v360_v26 = vmul.f32 0.2, %v322_v17  ;;  %508 = vmatpush1.bf16.msra.mxu0 %v426_v1  ;;  %621 = vmatpush1.bf16.msra.mxu1 %v428_v2  ;;  %v386_v31 = vmax.f32 %v245_v3, %v354_v14  ;;  %v134_v3 = vpop.permute.xlu1 %133 }
  0xf0   :  { %v359_v27 = vmul.f32 0.2, %v251_v22  ;;  %v361_v28 = vmul.f32 0.2, %v324_v23  ;;  %v387_v34 = vmax.f32 %v247_v8, %v355_v20  ;;  %v389_v35 = vmax.f32 %v320_v9, %v357_v21 }
  0xf1   :  { %v390_v32 = vmax.f32 %v249_v16, %v358_v25  ;;  %v392_v33 = vmax.f32 %v322_v17, %v360_v26 }
  0xf2   :  { %v391_v36 = vmax.f32 %v251_v22, %v359_v27  ;;  %v393_v37 = vmax.f32 %v324_v23, %v361_v28  ;;  %v254_v38 = vpop.f32.mrb[8].mxu0  ;;  %v327_v39 = vpop.f32.mrb[8].mxu1 }
  0xf3   :  { %v430_v40 = vpack.c.bf16 %v390_v32, %v386_v31  ;;  %v432_v41 = vpack.c.bf16 %v392_v33, %v388_v24  ;;  %v255_v42 = vadd.f32 %v254_v38, %v119_v29  ;;  %v328_v43 = vadd.f32 %v327_v39, %v119_v29  ;;  %v256_v44 = vpop.f32.mrb[9].mxu0  ;;  %v329_v45 = vpop.f32.mrb[9].mxu1 }
  0xf4   :  { %v257_v46 = vadd.f32 %v256_v44, %v119_v29  ;;  %v330_v47 = vadd.f32 %v329_v45, %v119_v29  ;;  %v258_v48 = vpop.f32.mrb[10].mxu0  ;;  %v331_v49 = vpop.f32.mrb[10].mxu1  ;;  %v431_v50 = vpack.c.bf16 %v391_v36, %v387_v34  ;;  %v433_v51 = vpack.c.bf16 %v393_v37, %v389_v35 }
  0xf5   :  { %v362_v52 = vmul.f32 0.2, %v255_v42  ;;  %v364_v53 = vmul.f32 0.2, %v328_v43  ;;  %v259_v54 = vadd.f32 %v258_v48, %v124_v30  ;;  %v332_v55 = vadd.f32 %v331_v49, %v124_v30  ;;  %v260_v56 = vpop.f32.mrb[11].mxu0  ;;  %v333_v57 = vpop.f32.mrb[11].mxu1 }
  0xf6   :  { %v363_v58 = vmul.f32 0.2, %v257_v46  ;;  %v365_v59 = vmul.f32 0.2, %v330_v47  ;;  %v261_v60 = vadd.f32 %v260_v56, %v124_v30  ;;  %v334_v61 = vadd.f32 %v333_v57, %v124_v30  ;;  %509 = vmatprep.subr.bf16.mxu0 %v431_v50  ;;  %622 = vmatprep.subr.bf16.mxu1 %v433_v51  ;;  %v129_v2 = vpop.permute.xlu0 %128  ;;  %v1119_v56 = vld [vmem:[%s1657_s3 + $0x18] sm:$0xff]   ;;  %v1120_v57 = vld [vmem:[%s1657_s3 + $0x20] sm:$0xff]  }
  0xf7   :  { %v366_v62 = vmul.f32 0.2, %v259_v54  ;;  %v368_v63 = vmul.f32 0.2, %v332_v55  ;;  %510 = vmatpush1.bf16.msra.mxu0 %v430_v40  ;;  %623 = vmatpush1.bf16.msra.mxu1 %v432_v41  ;;  %v394_v5 = vmax.f32 %v255_v42, %v362_v52  ;;  %v396_v6 = vmax.f32 %v328_v43, %v364_v53  ;;  %v1116_v53 = vld [vmem:[%s1657_s3] sm:$0xff]  }
  0xf8   :  { %v367_v0 = vmul.f32 0.2, %v261_v60  ;;  %v369_v1 = vmul.f32 0.2, %v334_v61  ;;  %v395_v9 = vmax.f32 %v257_v46, %v363_v58  ;;  %v397_v10 = vmax.f32 %v330_v47, %v365_v59  ;;  %v1121_v58 = vld [vmem:[%s1657_s3 + $0x28] sm:$0xff]   ;;  %v1122_v59 = vld [vmem:[%s1657_s3 + $0x30] sm:$0xff]  }
  0xf9   :  { %v398_v7 = vmax.f32 %v259_v54, %v366_v62  ;;  %v400_v8 = vmax.f32 %v332_v55, %v368_v63  ;;  %v1117_v54 = vld [vmem:[%s1657_s3 + $0x8] sm:$0xff]   ;;  %v1118_v55 = vld [vmem:[%s1657_s3 + $0x10] sm:$0xff]  }
  0xfa   :  { %v399_v11 = vmax.f32 %v261_v60, %v367_v0  ;;  %v401_v12 = vmax.f32 %v334_v61, %v369_v1  ;;  %v264_v13 = vpop.f32.mrb[12].mxu0  ;;  %v337_v14 = vpop.f32.mrb[12].mxu1  ;;  %v1123_v60 = vld [vmem:[%s1657_s3 + $0x38] sm:$0xff]   ;;  %v1126_v61 = vmov 0.0  }
  0xfb   :  { %v434_v15 = vpack.c.bf16 %v398_v7, %v394_v5  ;;  %v436_v16 = vpack.c.bf16 %v400_v8, %v396_v6  ;;  %v265_v17 = vadd.f32 %v264_v13, %v129_v2  ;;  %v338_v18 = vadd.f32 %v337_v14, %v129_v2  ;;  %v266_v19 = vpop.f32.mrb[13].mxu0  ;;  %v339_v20 = vpop.f32.mrb[13].mxu1  ;;  %47 = vst.msk [vmem:[%s1658_s4] sm:$0xff] %vm46_vm3, %v1126_v61 }
  0xfc   :  { %v267_v21 = vadd.f32 %v266_v19, %v129_v2  ;;  %v340_v22 = vadd.f32 %v339_v20, %v129_v2  ;;  %v268_v23 = vpop.f32.mrb[14].mxu0  ;;  %v341_v24 = vpop.f32.mrb[14].mxu1  ;;  %v435_v25 = vpack.c.bf16 %v399_v11, %v395_v9  ;;  %v437_v26 = vpack.c.bf16 %v401_v12, %v397_v10  ;;  %48 = vst.msk [vmem:[%s1658_s4 + $0x8] sm:$0xff] %vm46_vm3, %v1126_v61 }
  0xfd   :  { %v370_v27 = vmul.f32 0.2, %v265_v17  ;;  %v372_v28 = vmul.f32 0.2, %v338_v18  ;;  %v269_v29 = vadd.f32 %v268_v23, %v134_v3  ;;  %v342_v30 = vadd.f32 %v341_v24, %v134_v3  ;;  %v270_v31 = vpop.f32.mrb[15].mxu0  ;;  %v343_v32 = vpop.f32.mrb[15].mxu1 }
  0xfe   :  { %v371_v33 = vmul.f32 0.2, %v267_v21  ;;  %v373_v34 = vmul.f32 0.2, %v340_v22  ;;  %v271_v35 = vadd.f32 %v270_v31, %v134_v3  ;;  %v344_v36 = vadd.f32 %v343_v32, %v134_v3  ;;  %511 = vmatprep.subr.bf16.mxu0 %v435_v25  ;;  %624 = vmatprep.subr.bf16.mxu1 %v437_v26  ;;  %49 = vst.msk [vmem:[%s1658_s4 + $0x10] sm:$0xff] %vm46_vm3, %v1126_v61 }
  0xff   :  { %v374_v37 = vmul.f32 0.2, %v269_v29  ;;  %v376_v38 = vmul.f32 0.2, %v342_v30  ;;  %512 = vmatpush1.bf16.msra.mxu0 %v434_v15  ;;  %625 = vmatpush1.bf16.msra.mxu1 %v436_v16  ;;  %v402_v41 = vmax.f32 %v265_v17, %v370_v27  ;;  %v404_v42 = vmax.f32 %v338_v18, %v372_v28  ;;  %50 = vst.msk [vmem:[%s1658_s4 + $0x18] sm:$0xff] %vm46_vm3, %v1126_v61 }
 0x100   :  { %v375_v39 = vmul.f32 0.2, %v271_v35  ;;  %v377_v40 = vmul.f32 0.2, %v344_v36  ;;  %v403_v45 = vmax.f32 %v267_v21, %v371_v33  ;;  %v405_v46 = vmax.f32 %v340_v22, %v373_v34  ;;  %51 = vst.msk [vmem:[%s1658_s4 + $0x20] sm:$0xff] %vm46_vm3, %v1126_v61  ;;  %52 = vst.msk [vmem:[%s1658_s4 + $0x28] sm:$0xff] %vm46_vm3, %v1126_v61 }
 0x101   :  { %v406_v43 = vmax.f32 %v269_v29, %v374_v37  ;;  %v408_v44 = vmax.f32 %v342_v30, %v376_v38  ;;  %53 = vst.msk [vmem:[%s1658_s4 + $0x30] sm:$0xff] %vm46_vm3, %v1126_v61  ;;  %54 = vst.msk [vmem:[%s1658_s4 + $0x38] sm:$0xff] %vm46_vm3, %v1126_v61 }
 0x102   :  { %v407_v47 = vmax.f32 %v271_v35, %v375_v39  ;;  %v409_v48 = vmax.f32 %v344_v36, %v377_v40  ;;  %55 = vst.msk [vmem:[%s1658_s4 + $0x40] sm:$0xff] %vm46_vm3, %v1126_v61  ;;  %56 = vst.msk [vmem:[%s1658_s4 + $0x48] sm:$0xff] %vm46_vm3, %v1126_v61 }
 0x103   :  { %v438_v49 = vpack.c.bf16 %v406_v43, %v402_v41  ;;  %v440_v50 = vpack.c.bf16 %v408_v44, %v404_v42  ;;  %57 = vst.msk [vmem:[%s1658_s4 + $0x50] sm:$0xff] %vm46_vm3, %v1126_v61  ;;  %58 = vst.msk [vmem:[%s1658_s4 + $0x58] sm:$0xff] %vm46_vm3, %v1126_v61 }
 0x104   :  { %v439_v51 = vpack.c.bf16 %v407_v47, %v403_v45  ;;  %v441_v52 = vpack.c.bf16 %v409_v48, %v405_v46  ;;  %59 = vst.msk [vmem:[%s1658_s4 + $0x60] sm:$0xff] %vm46_vm3, %v1126_v61  ;;  %60 = vst.msk [vmem:[%s1658_s4 + $0x68] sm:$0xff] %vm46_vm3, %v1126_v61 }
 0x105   :  { %61 = vst.msk [vmem:[%s1658_s4 + $0x70] sm:$0xff] %vm46_vm3, %v1126_v61  ;;  %62 = vst.msk [vmem:[%s1658_s4 + $0x78] sm:$0xff] %vm46_vm3, %v1126_v61 }
 0x106   :  { %513 = vmatprep.subr.bf16.mxu0 %v439_v51  ;;  %626 = vmatprep.subr.bf16.mxu1 %v441_v52  ;;  %64 = vst.msk [vmem:[%s1659_s5 + $0x8] sm:$0xff] %vm46_vm3, %v1126_v61  ;;  %63 = vst.msk [vmem:[%s1659_s5] sm:$0xff] %vm46_vm3, %v1126_v61 }
 0x107   :  { %514 = vmatpush1.bf16.msra.mxu0 %v438_v49  ;;  %627 = vmatpush1.bf16.msra.mxu1 %v440_v50  ;;  %65 = vst.msk [vmem:[%s1659_s5 + $0x10] sm:$0xff] %vm46_vm3, %v1126_v61  ;;  %66 = vst.msk [vmem:[%s1659_s5 + $0x18] sm:$0xff] %vm46_vm3, %v1126_v61 }
 0x108   :  { %67 = vst.msk [vmem:[%s1659_s5 + $0x20] sm:$0xff] %vm46_vm3, %v1126_v61  ;;  %68 = vst.msk [vmem:[%s1659_s5 + $0x28] sm:$0xff] %vm46_vm3, %v1126_v61 }
 0x109   :  { %69 = vst.msk [vmem:[%s1659_s5 + $0x30] sm:$0xff] %vm46_vm3, %v1126_v61  ;;  %70 = vst.msk [vmem:[%s1659_s5 + $0x38] sm:$0xff] %vm46_vm3, %v1126_v61 }
 0x10a   :  { %1090 = vmatmul.mubr.msk.bf16.vlgmr.msra.gmra.mrb[16].mxu0 %vm482_vm2, %v1116_v53  ;;  %1098 = vmatmul.mubr.msk.bf16.vlgmr.msra.gmra.mrb[16].mxu1 %vm482_vm2, %v1116_v53  ;;  %71 = vst.msk [vmem:[%s1659_s5 + $0x40] sm:$0xff] %vm46_vm3, %v1126_v61  ;;  %72 = vst.msk [vmem:[%s1659_s5 + $0x48] sm:$0xff] %vm46_vm3, %v1126_v61 }
 0x10b   :  { %549 = vmatprep.mubr.bf16.mxu0 %v1125_v4  ;;  %662 = vmatprep.mubr.bf16.mxu1 %v1125_v4  ;;  %73 = vst.msk [vmem:[%s1659_s5 + $0x50] sm:$0xff] %vm46_vm3, %v1126_v61  ;;  %74 = vst.msk [vmem:[%s1659_s5 + $0x58] sm:$0xff] %vm46_vm3, %v1126_v61 }
 0x10c   :  { %75 = vst.msk [vmem:[%s1659_s5 + $0x60] sm:$0xff] %vm46_vm3, %v1126_v61  ;;  %76 = vst.msk [vmem:[%s1659_s5 + $0x68] sm:$0xff] %vm46_vm3, %v1126_v61 }
 0x10d   :  { %77 = vst.msk [vmem:[%s1659_s5 + $0x70] sm:$0xff] %vm46_vm3, %v1126_v61  ;;  %78 = vst.msk [vmem:[%s1659_s5 + $0x78] sm:$0xff] %vm46_vm3, %v1126_v61 }
 0x112   :  { %1091 = vmatmul.mubr.msk.bf16.gmra.mrb[20].mxu0 %vm482_vm2, %v1117_v54  ;;  %1099 = vmatmul.mubr.msk.bf16.gmra.mrb[20].mxu1 %vm482_vm2, %v1117_v54 }
 0x113   :  { %559 = vmatprep.mubr.bf16.mxu0 %v1125_v4  ;;  %672 = vmatprep.mubr.bf16.mxu1 %v1125_v4 }
 0x11a   :  { %1092 = vmatmul.mubr.msk.bf16.gmra.mrb[24].mxu0 %vm482_vm2, %v1118_v55  ;;  %1100 = vmatmul.mubr.msk.bf16.gmra.mrb[24].mxu1 %vm482_vm2, %v1118_v55 }
 0x11b   :  { %569 = vmatprep.mubr.bf16.mxu0 %v1125_v4  ;;  %682 = vmatprep.mubr.bf16.mxu1 %v1125_v4 }
 0x122   :  { %1093 = vmatmul.mubr.msk.bf16.gmra.mrb[28].mxu0 %vm482_vm2, %v1119_v56  ;;  %1101 = vmatmul.mubr.msk.bf16.gmra.mrb[28].mxu1 %vm482_vm2, %v1119_v56 }
 0x123   :  { %579 = vmatprep.mubr.bf16.mxu0 %v1125_v4  ;;  %692 = vmatprep.mubr.bf16.mxu1 %v1125_v4 }
 0x12a   :  { %1094 = vmatmul.mubr.msk.bf16.gmra.mrb[32].mxu0 %vm482_vm2, %v1120_v57  ;;  %1102 = vmatmul.mubr.msk.bf16.gmra.mrb[32].mxu1 %vm482_vm2, %v1120_v57 }
 0x12b   :  { %589 = vmatprep.mubr.bf16.mxu0 %v1125_v4  ;;  %702 = vmatprep.mubr.bf16.mxu1 %v1125_v4 }
 0x132   :  { %1095 = vmatmul.mubr.msk.bf16.gmra.mrb[36].mxu0 %vm482_vm2, %v1121_v58  ;;  %1103 = vmatmul.mubr.msk.bf16.gmra.mrb[36].mxu1 %vm482_vm2, %v1121_v58 }
 0x133   :  { %599 = vmatprep.mubr.bf16.mxu0 %v1125_v4  ;;  %712 = vmatprep.mubr.bf16.mxu1 %v1125_v4 }
 0x13a   :  { %1096 = vmatmul.mubr.msk.bf16.gmra.mrb[40].mxu0 %vm482_vm2, %v1122_v59  ;;  %1104 = vmatmul.mubr.msk.bf16.gmra.mrb[40].mxu1 %vm482_vm2, %v1122_v59 }
 0x13b   :  { %609 = vmatprep.mubr.bf16.mxu0 %v1125_v4  ;;  %722 = vmatprep.mubr.bf16.mxu1 %v1125_v4 }
 0x142   :  { %1097 = vmatmul.mubr.msk.bf16.gmra.mrb[44].mxu0 %vm482_vm2, %v1123_v60  ;;  %1105 = vmatmul.mubr.msk.bf16.gmra.mrb[44].mxu1 %vm482_vm2, %v1123_v60 }
 0x1dd   :  { %v541_v4 = vpop.f32.mrb[16].mxu0  ;;  %v654_v62 = vpop.f32.mrb[16].mxu1 }
 0x1de   :  { %v878_v63 = vmul.f32 %v541_v4, %v541_v4  ;;  %v543_v0 = vpop.f32.mrb[17].mxu0  ;;  %v656_v1 = vpop.f32.mrb[17].mxu1  ;;  %v880_v6 = vmul.f32 %v654_v62, %v654_v62 }
 0x1df   :  { %v749_v2 = vadd.f32 %v543_v0, %v541_v4  ;;  %v879_v3 = vmul.f32 %v543_v0, %v543_v0  ;;  %v545_v5 = vpop.f32.mrb[18].mxu0  ;;  %v658_v7 = vpop.f32.mrb[18].mxu1  ;;  %v881_v15 = vmul.f32 %v656_v1, %v656_v1 }
 0x1e0   :  { %v882_v8 = vmul.f32 %v545_v5, %v545_v5  ;;  %v547_v9 = vpop.f32.mrb[19].mxu0  ;;  %v660_v10 = vpop.f32.mrb[19].mxu1  ;;  %v884_v16 = vmul.f32 %v658_v7, %v658_v7 }
 0x1e1   :  { %v942_v11 = vadd.f32 %v879_v3, %v878_v63  ;;  %v754_v12 = vadd.f32 %v547_v9, %v545_v5  ;;  %v883_v13 = vmul.f32 %v547_v9, %v547_v9  ;;  %v750_v14 = vadd.f32 %v749_v2, %v654_v62 }
 0x1e2   :  { %v885_v21 = vmul.f32 %v660_v10, %v660_v10 }
 0x1e3   :  { %v947_v17 = vadd.f32 %v883_v13, %v882_v8  ;;  %v755_v18 = vadd.f32 %v754_v12, %v658_v7  ;;  %v751_v19 = vadd.f32 %v750_v14, %v656_v1  ;;  %v943_v20 = vadd.f32 %v942_v11, %v880_v6 }
 0x1e5   :  { %v551_v22 = vpop.f32.mrb[20].mxu0  ;;  %752 = vadd.xlane.f32.xlu0 %v751_v19  ;;  %v756_v23 = vadd.f32 %v755_v18, %v660_v10  ;;  %v664_v24 = vpop.f32.mrb[20].mxu1  ;;  %v948_v25 = vadd.f32 %v947_v17, %v884_v16  ;;  %v944_v26 = vadd.f32 %v943_v20, %v881_v15 }
 0x1e6   :  { %v886_v27 = vmul.f32 %v551_v22, %v551_v22  ;;  %v553_v28 = vpop.f32.mrb[21].mxu0  ;;  %v666_v29 = vpop.f32.mrb[21].mxu1  ;;  %v888_v33 = vmul.f32 %v664_v24, %v664_v24 }
 0x1e7   :  { %v759_v30 = vadd.f32 %v553_v28, %v551_v22  ;;  %v887_v31 = vmul.f32 %v553_v28, %v553_v28  ;;  %757 = vadd.xlane.f32.xlu1 %v756_v23  ;;  %v555_v32 = vpop.f32.mrb[22].mxu0  ;;  %v949_v34 = vadd.f32 %v948_v25, %v885_v21  ;;  %v668_v35 = vpop.f32.mrb[22].mxu1  ;;  %v889_v43 = vmul.f32 %v666_v29, %v666_v29 }
 0x1e8   :  { %v890_v36 = vmul.f32 %v555_v32, %v555_v32  ;;  %v557_v37 = vpop.f32.mrb[23].mxu0  ;;  %v670_v38 = vpop.f32.mrb[23].mxu1  ;;  %v892_v44 = vmul.f32 %v668_v35, %v668_v35 }
 0x1e9   :  { %v952_v39 = vadd.f32 %v887_v31, %v886_v27  ;;  %v760_v40 = vadd.f32 %v759_v30, %v664_v24  ;;  %v764_v41 = vadd.f32 %v557_v37, %v555_v32  ;;  %v891_v42 = vmul.f32 %v557_v37, %v557_v37  ;;  %950 = vadd.xlane.f32.xlu0 %v949_v34 }
 0x1ea   :  { %v893_v49 = vmul.f32 %v670_v38, %v670_v38 }
 0x1eb   :  { %v957_v45 = vadd.f32 %v891_v42, %v890_v36  ;;  %945 = vadd.xlane.f32.xlu1 %v944_v26  ;;  %v765_v46 = vadd.f32 %v764_v41, %v668_v35  ;;  %v761_v47 = vadd.f32 %v760_v40, %v666_v29  ;;  %v953_v48 = vadd.f32 %v952_v39, %v888_v33 }
 0x1ed   :  { %762 = vadd.xlane.f32.xlu0 %v761_v47  ;;  %v561_v50 = vpop.f32.mrb[24].mxu0  ;;  %v766_v51 = vadd.f32 %v765_v46, %v670_v38  ;;  %v954_v52 = vadd.f32 %v953_v48, %v889_v43  ;;  %v674_v53 = vpop.f32.mrb[24].mxu1  ;;  %v958_v54 = vadd.f32 %v957_v45, %v892_v44 }
 0x1ee   :  { %v894_v55 = vmul.f32 %v561_v50, %v561_v50  ;;  %v563_v56 = vpop.f32.mrb[25].mxu0  ;;  %v676_v57 = vpop.f32.mrb[25].mxu1  ;;  %v896_v4 = vmul.f32 %v674_v53, %v674_v53 }
 0x1ef   :  { %v769_v58 = vadd.f32 %v563_v56, %v561_v50  ;;  %v895_v59 = vmul.f32 %v563_v56, %v563_v56  ;;  %v565_v60 = vpop.f32.mrb[26].mxu0  ;;  %955 = vadd.xlane.f32.xlu1 %v954_v52  ;;  %v678_v62 = vpop.f32.mrb[26].mxu1  ;;  %v959_v63 = vadd.f32 %v958_v54, %v893_v49  ;;  %v897_v2 = vmul.f32 %v676_v57, %v676_v57 }
 0x1f0   :  { %v898_v0 = vmul.f32 %v565_v60, %v565_v60  ;;  %v567_v1 = vpop.f32.mrb[27].mxu0  ;;  %v900_v3 = vmul.f32 %v678_v62, %v678_v62  ;;  %v680_v5 = vpop.f32.mrb[27].mxu1 }
 0x1f1   :  { %v962_v6 = vadd.f32 %v895_v59, %v894_v55  ;;  %767 = vadd.xlane.f32.xlu0 %v766_v51  ;;  %v774_v7 = vadd.f32 %v567_v1, %v565_v60  ;;  %v899_v8 = vmul.f32 %v567_v1, %v567_v1  ;;  %v770_v9 = vadd.f32 %v769_v58, %v674_v53 }
 0x1f2   :  { %v901_v14 = vmul.f32 %v680_v5, %v680_v5 }
 0x1f3   :  { %v967_v10 = vadd.f32 %v899_v8, %v898_v0  ;;  %v775_v11 = vadd.f32 %v774_v7, %v678_v62  ;;  %v771_v12 = vadd.f32 %v770_v9, %v676_v57  ;;  %v963_v13 = vadd.f32 %v962_v6, %v896_v4 }
 0x1f5   :  { %960 = vadd.xlane.f32.xlu0 %v959_v63  ;;  %v571_v15 = vpop.f32.mrb[28].mxu0  ;;  %772 = vadd.xlane.f32.xlu1 %v771_v12  ;;  %v776_v16 = vadd.f32 %v775_v11, %v680_v5  ;;  %v684_v17 = vpop.f32.mrb[28].mxu1  ;;  %v964_v18 = vadd.f32 %v963_v13, %v897_v2  ;;  %v968_v19 = vadd.f32 %v967_v10, %v900_v3 }
 0x1f6   :  { %v902_v20 = vmul.f32 %v571_v15, %v571_v15  ;;  %v573_v21 = vpop.f32.mrb[29].mxu0  ;;  %v686_v61 = vpop.f32.mrb[29].mxu1  ;;  %v904_v25 = vmul.f32 %v684_v17, %v684_v17 }
 0x1f7   :  { %v779_v22 = vadd.f32 %v573_v21, %v571_v15  ;;  %v903_v23 = vmul.f32 %v573_v21, %v573_v21  ;;  %v575_v24 = vpop.f32.mrb[30].mxu0  ;;  %v688_v26 = vpop.f32.mrb[30].mxu1  ;;  %v969_v27 = vadd.f32 %v968_v19, %v901_v14  ;;  %v905_v30 = vmul.f32 %v686_v61, %v686_v61 }
 0x1f8   :  { %v906_v28 = vmul.f32 %v575_v24, %v575_v24  ;;  %v577_v29 = vpop.f32.mrb[31].mxu0  ;;  %v908_v31 = vmul.f32 %v688_v26, %v688_v26  ;;  %v690_v32 = vpop.f32.mrb[31].mxu1 }
 0x1f9   :  { %v972_v33 = vadd.f32 %v903_v23, %v902_v20  ;;  %777 = vadd.xlane.f32.xlu0 %v776_v16  ;;  %v784_v34 = vadd.f32 %v577_v29, %v575_v24  ;;  %v907_v35 = vmul.f32 %v577_v29, %v577_v29  ;;  %v780_v36 = vadd.f32 %v779_v22, %v684_v17 }
 0x1fa   :  { %965 = vadd.xlane.f32.xlu1 %v964_v18  ;;  %v909_v41 = vmul.f32 %v690_v32, %v690_v32 }
 0x1fb   :  { %v977_v37 = vadd.f32 %v907_v35, %v906_v28  ;;  %v785_v38 = vadd.f32 %v784_v34, %v688_v26  ;;  %v781_v39 = vadd.f32 %v780_v36, %v686_v61  ;;  %v973_v40 = vadd.f32 %v972_v33, %v904_v25 }
 0x1fd   :  { %970 = vadd.xlane.f32.xlu0 %v969_v27  ;;  %v581_v42 = vpop.f32.mrb[32].mxu0  ;;  %v786_v43 = vadd.f32 %v785_v38, %v690_v32  ;;  %v694_v44 = vpop.f32.mrb[32].mxu1  ;;  %v974_v45 = vadd.f32 %v973_v40, %v905_v30  ;;  %v978_v46 = vadd.f32 %v977_v37, %v908_v31 }
 0x1fe   :  { %v910_v47 = vmul.f32 %v581_v42, %v581_v42  ;;  %v583_v48 = vpop.f32.mrb[33].mxu0  ;;  %782 = vadd.xlane.f32.xlu1 %v781_v39  ;;  %v696_v49 = vpop.f32.mrb[33].mxu1  ;;  %v912_v53 = vmul.f32 %v694_v44, %v694_v44 }
 0x1ff   :  { %v789_v50 = vadd.f32 %v583_v48, %v581_v42  ;;  %v911_v51 = vmul.f32 %v583_v48, %v583_v48  ;;  %v585_v52 = vpop.f32.mrb[34].mxu0  ;;  %v698_v54 = vpop.f32.mrb[34].mxu1  ;;  %v979_v55 = vadd.f32 %v978_v46, %v909_v41  ;;  %v913_v58 = vmul.f32 %v696_v49, %v696_v49 }
 0x200   :  { %v914_v56 = vmul.f32 %v585_v52, %v585_v52  ;;  %v587_v57 = vpop.f32.mrb[35].mxu0  ;;  %v916_v59 = vmul.f32 %v698_v54, %v698_v54  ;;  %v700_v60 = vpop.f32.mrb[35].mxu1 }
 0x201   :  { %v982_v4 = vadd.f32 %v911_v51, %v910_v47  ;;  %787 = vadd.xlane.f32.xlu0 %v786_v43  ;;  %v794_v62 = vadd.f32 %v587_v57, %v585_v52  ;;  %v915_v63 = vmul.f32 %v587_v57, %v587_v57  ;;  %v790_v0 = vadd.f32 %v789_v50, %v694_v44 }
 0x202   :  { %975 = vadd.xlane.f32.xlu1 %v974_v45  ;;  %v917_v6 = vmul.f32 %v700_v60, %v700_v60 }
 0x203   :  { %v987_v1 = vadd.f32 %v915_v63, %v914_v56  ;;  %v795_v2 = vadd.f32 %v794_v62, %v698_v54  ;;  %v791_v3 = vadd.f32 %v790_v0, %v696_v49  ;;  %v983_v5 = vadd.f32 %v982_v4, %v912_v53 }
 0x205   :  { %980 = vadd.xlane.f32.xlu0 %v979_v55  ;;  %v591_v7 = vpop.f32.mrb[36].mxu0  ;;  %v796_v8 = vadd.f32 %v795_v2, %v700_v60  ;;  %v704_v9 = vpop.f32.mrb[36].mxu1  ;;  %v984_v10 = vadd.f32 %v983_v5, %v913_v58  ;;  %v988_v11 = vadd.f32 %v987_v1, %v916_v59 }
 0x206   :  { %v918_v12 = vmul.f32 %v591_v7, %v591_v7  ;;  %v593_v13 = vpop.f32.mrb[37].mxu0  ;;  %792 = vadd.xlane.f32.xlu1 %v791_v3  ;;  %v706_v14 = vpop.f32.mrb[37].mxu1  ;;  %v920_v18 = vmul.f32 %v704_v9, %v704_v9 }
 0x207   :  { %v799_v15 = vadd.f32 %v593_v13, %v591_v7  ;;  %v919_v16 = vmul.f32 %v593_v13, %v593_v13  ;;  %v595_v17 = vpop.f32.mrb[38].mxu0  ;;  %v708_v19 = vpop.f32.mrb[38].mxu1  ;;  %v989_v20 = vadd.f32 %v988_v11, %v917_v6  ;;  %v921_v22 = vmul.f32 %v706_v14, %v706_v14 }
 0x208   :  { %v922_v21 = vmul.f32 %v595_v17, %v595_v17  ;;  %v597_v61 = vpop.f32.mrb[39].mxu0  ;;  %v924_v23 = vmul.f32 %v708_v19, %v708_v19  ;;  %v710_v24 = vpop.f32.mrb[39].mxu1 }
 0x209   :  { %v992_v25 = vadd.f32 %v919_v16, %v918_v12  ;;  %797 = vadd.xlane.f32.xlu0 %v796_v8  ;;  %v804_v26 = vadd.f32 %v597_v61, %v595_v17  ;;  %v923_v27 = vmul.f32 %v597_v61, %v597_v61  ;;  %v800_v28 = vadd.f32 %v799_v15, %v704_v9 }
 0x20a   :  { %985 = vadd.xlane.f32.xlu1 %v984_v10  ;;  %v925_v33 = vmul.f32 %v710_v24, %v710_v24 }
 0x20b   :  { %v997_v29 = vadd.f32 %v923_v27, %v922_v21  ;;  %v805_v30 = vadd.f32 %v804_v26, %v708_v19  ;;  %v801_v31 = vadd.f32 %v800_v28, %v706_v14  ;;  %v993_v32 = vadd.f32 %v992_v25, %v920_v18 }
 0x20d   :  { %990 = vadd.xlane.f32.xlu0 %v989_v20  ;;  %v601_v34 = vpop.f32.mrb[40].mxu0  ;;  %v806_v35 = vadd.f32 %v805_v30, %v710_v24  ;;  %v714_v36 = vpop.f32.mrb[40].mxu1  ;;  %v994_v37 = vadd.f32 %v993_v32, %v921_v22  ;;  %v998_v38 = vadd.f32 %v997_v29, %v924_v23  ;;  %v733_v30 = vld [vmem:[%s1658_s4] sm:$0xff]  ;;  %v734_v32 = vld [vmem:[%s1658_s4 + $0x8] sm:$0xff] }
 0x20e   :  { %v926_v39 = vmul.f32 %v601_v34, %v601_v34  ;;  %v603_v40 = vpop.f32.mrb[41].mxu0  ;;  %802 = vadd.xlane.f32.xlu1 %v801_v31  ;;  %v716_v41 = vpop.f32.mrb[41].mxu1  ;;  %v928_v45 = vmul.f32 %v714_v36, %v714_v36 }
 0x20f   :  { %v809_v42 = vadd.f32 %v603_v40, %v601_v34  ;;  %v927_v43 = vmul.f32 %v603_v40, %v603_v40  ;;  %v605_v44 = vpop.f32.mrb[42].mxu0  ;;  %v718_v46 = vpop.f32.mrb[42].mxu1  ;;  %v999_v47 = vadd.f32 %v998_v38, %v925_v33  ;;  %v929_v50 = vmul.f32 %v716_v41, %v716_v41  ;;  %v862_v38 = vld [vmem:[%s1659_s5] sm:$0xff] }
 0x210   :  { %v930_v48 = vmul.f32 %v605_v44, %v605_v44  ;;  %v607_v49 = vpop.f32.mrb[43].mxu0  ;;  %v932_v51 = vmul.f32 %v718_v46, %v718_v46  ;;  %v720_v52 = vpop.f32.mrb[43].mxu1 }
 0x211   :  { %v1002_v53 = vadd.f32 %v927_v43, %v926_v39  ;;  %807 = vadd.xlane.f32.xlu0 %v806_v35  ;;  %v814_v54 = vadd.f32 %v607_v49, %v605_v44  ;;  %v931_v55 = vmul.f32 %v607_v49, %v607_v49  ;;  %v810_v56 = vadd.f32 %v809_v42, %v714_v36  ;;  %v863_v35 = vld [vmem:[%s1659_s5 + $0x8] sm:$0xff]  ;;  %v864_v44 = vld [vmem:[%s1659_s5 + $0x10] sm:$0xff] }
 0x212   :  { %995 = vadd.xlane.f32.xlu1 %v994_v37  ;;  %v933_v4 = vmul.f32 %v720_v52, %v720_v52 }
 0x213   :  { %v1007_v57 = vadd.f32 %v931_v55, %v930_v48  ;;  %v815_v58 = vadd.f32 %v814_v54, %v718_v46  ;;  %v811_v59 = vadd.f32 %v810_v56, %v716_v41  ;;  %v1003_v60 = vadd.f32 %v1002_v53, %v928_v45  ;;  %v735_v41 = vld [vmem:[%s1658_s4 + $0x10] sm:$0xff]  ;;  %v736_v46 = vld [vmem:[%s1658_s4 + $0x18] sm:$0xff] }
 0x215   :  { %1000 = vadd.xlane.f32.xlu0 %v999_v47  ;;  %v611_v62 = vpop.f32.mrb[44].mxu0  ;;  %v816_v63 = vadd.f32 %v815_v58, %v720_v52  ;;  %v724_v0 = vpop.f32.mrb[44].mxu1  ;;  %v1004_v1 = vadd.f32 %v1003_v60, %v929_v50  ;;  %v1008_v2 = vadd.f32 %v1007_v57, %v932_v51  ;;  %v865_v51 = vld [vmem:[%s1659_s5 + $0x18] sm:$0xff]  ;;  %v737_v52 = vld [vmem:[%s1658_s4 + $0x20] sm:$0xff]  ;;  %v738_v57 = vld [vmem:[%s1658_s4 + $0x28] sm:$0xff] }
 0x216   :  { %v934_v3 = vmul.f32 %v611_v62, %v611_v62  ;;  %v613_v5 = vpop.f32.mrb[45].mxu0  ;;  %812 = vadd.xlane.f32.xlu1 %v811_v59  ;;  %v726_v6 = vpop.f32.mrb[45].mxu1  ;;  %v936_v10 = vmul.f32 %v724_v0, %v724_v0  ;;  %v866_v58 = vld [vmem:[%s1659_s5 + $0x20] sm:$0xff] }
 0x217   :  { %v819_v7 = vadd.f32 %v613_v5, %v611_v62  ;;  %v935_v8 = vmul.f32 %v613_v5, %v613_v5  ;;  %v615_v9 = vpop.f32.mrb[46].mxu0  ;;  %v728_v11 = vpop.f32.mrb[46].mxu1  ;;  %v1009_v12 = vadd.f32 %v1008_v2, %v933_v4  ;;  %v937_v15 = vmul.f32 %v726_v6, %v726_v6 }
 0x218   :  { %v938_v13 = vmul.f32 %v615_v9, %v615_v9  ;;  %v617_v14 = vpop.f32.mrb[47].mxu0  ;;  %v940_v16 = vmul.f32 %v728_v11, %v728_v11  ;;  %v730_v17 = vpop.f32.mrb[47].mxu1 }
 0x219   :  { %v1012_v18 = vadd.f32 %v935_v8, %v934_v3  ;;  %817 = vadd.xlane.f32.xlu0 %v816_v63  ;;  %v824_v19 = vadd.f32 %v617_v14, %v615_v9  ;;  %v939_v20 = vmul.f32 %v617_v14, %v617_v14  ;;  %v820_v21 = vadd.f32 %v819_v7, %v724_v0  ;;  %v867_v63 = vld [vmem:[%s1659_s5 + $0x28] sm:$0xff]  ;;  %v739_v0 = vld [vmem:[%s1658_s4 + $0x30] sm:$0xff] }
 0x21a   :  { %1005 = vadd.xlane.f32.xlu1 %v1004_v1  ;;  %v941_v26 = vmul.f32 %v730_v17, %v730_v17  ;;  %v868_v7 = vld [vmem:[%s1659_s5 + $0x30] sm:$0xff] }
 0x21b   :  { %v1017_v61 = vadd.f32 %v939_v20, %v938_v13  ;;  %v825_v22 = vadd.f32 %v824_v19, %v728_v11  ;;  %v821_v23 = vadd.f32 %v820_v21, %v726_v6  ;;  %v1013_v24 = vadd.f32 %v1012_v18, %v936_v10  ;;  %v740_v6 = vld [vmem:[%s1658_s4 + $0x38] sm:$0xff]  ;;  %v741_v13 = vld [vmem:[%s1658_s4 + $0x40] sm:$0xff]  ;;  %v742_v18 = vld [vmem:[%s1658_s4 + $0x48] sm:$0xff] }
 0x21c   :  { %v870_v19 = vld [vmem:[%s1659_s5 + $0x40] sm:$0xff] }
 0x21d   :  { %1010 = vadd.xlane.f32.xlu0 %v1009_v12  ;;  %v826_v25 = vadd.f32 %v825_v22, %v730_v17  ;;  %v1014_v27 = vadd.f32 %v1013_v24, %v937_v15  ;;  %v1018_v28 = vadd.f32 %v1017_v61, %v940_v16  ;;  %v869_v12 = vld [vmem:[%s1659_s5 + $0x38] sm:$0xff]  ;;  %v743_v24 = vld [vmem:[%s1658_s4 + $0x50] sm:$0xff] }
 0x21e   :  { %822 = vadd.xlane.f32.xlu1 %v821_v23  ;;  %v871_v23 = vld [vmem:[%s1659_s5 + $0x48] sm:$0xff] }
 0x21f   :  { %v1019_v29 = vadd.f32 %v1018_v28, %v941_v26 }
 0x221   :  { %827 = vadd.xlane.f32.xlu0 %v826_v25 }
 0x222   :  { %1015 = vadd.xlane.f32.xlu1 %v1014_v27 }
 0x225   :  { %1020 = vadd.xlane.f32.xlu0 %v1019_v29  ;;  %v744_v29 = vld [vmem:[%s1658_s4 + $0x58] sm:$0xff] }
 0x272   :  { %v753_v31 = vpop.xlane.xlu0 %752 }
 0x273   :  { %v829_v33 = vadd.f32 %v753_v31, %v733_v30  ;;  %v872_v30 = vld [vmem:[%s1659_s5 + $0x50] sm:$0xff] }
 0x274   :  { %v758_v34 = vpop.xlane.xlu1 %757 }
 0x275   :  { %846 = vst.msk [vmem:[%s1658_s4] sm:$0xff] %vm46_vm3, %v829_v33  ;;  %v830_v36 = vadd.f32 %v758_v34, %v734_v32 }
 0x276   :  { %v951_v37 = vpop.xlane.xlu0 %950 }
 0x277   :  { %847 = vst.msk [vmem:[%s1658_s4 + $0x8] sm:$0xff] %vm46_vm3, %v830_v36  ;;  %v1023_v39 = vadd.f32 %v951_v37, %v863_v35  ;;  %v873_v35 = vld [vmem:[%s1659_s5 + $0x58] sm:$0xff]  ;;  %v745_v36 = vld [vmem:[%s1658_s4 + $0x60] sm:$0xff] }
 0x278   :  { %v946_v40 = vpop.xlane.xlu1 %945 }
 0x279   :  { %1039 = vst.msk [vmem:[%s1659_s5 + $0x8] sm:$0xff] %vm46_vm3, %v1023_v39  ;;  %v1022_v42 = vadd.f32 %v946_v40, %v862_v38 }
 0x27a   :  { %v763_v43 = vpop.xlane.xlu0 %762 }
 0x27b   :  { %1038 = vst.msk [vmem:[%s1659_s5] sm:$0xff] %vm46_vm3, %v1022_v42  ;;  %v831_v45 = vadd.f32 %v763_v43, %v735_v41  ;;  %v746_v41 = vld [vmem:[%s1658_s4 + $0x68] sm:$0xff]  ;;  %v874_v42 = vld [vmem:[%s1659_s5 + $0x60] sm:$0xff] }
 0x27c   :  { %v956_v47 = vpop.xlane.xlu1 %955 }
 0x27d   :  { %848 = vst.msk [vmem:[%s1658_s4 + $0x10] sm:$0xff] %vm46_vm3, %v831_v45  ;;  %v1024_v48 = vadd.f32 %v956_v47, %v864_v44  ;;  %v875_v47 = vld [vmem:[%s1659_s5 + $0x68] sm:$0xff] }
 0x27e   :  { %v768_v49 = vpop.xlane.xlu0 %767 }
 0x27f   :  { %v832_v50 = vadd.f32 %v768_v49, %v736_v46  ;;  %1040 = vst.msk [vmem:[%s1659_s5 + $0x10] sm:$0xff] %vm46_vm3, %v1024_v48  ;;  %v747_v48 = vld [vmem:[%s1658_s4 + $0x70] sm:$0xff] }
 0x281   :  { %849 = vst.msk [vmem:[%s1658_s4 + $0x18] sm:$0xff] %vm46_vm3, %v832_v50 }
 0x282   :  { %v961_v53 = vpop.xlane.xlu0 %960  ;;  %v773_v54 = vpop.xlane.xlu1 %772 }
 0x283   :  { %v1025_v55 = vadd.f32 %v961_v53, %v865_v51  ;;  %v833_v56 = vadd.f32 %v773_v54, %v737_v52  ;;  %v748_v53 = vld [vmem:[%s1658_s4 + $0x78] sm:$0xff]  ;;  %v876_v54 = vld [vmem:[%s1659_s5 + $0x70] sm:$0xff] }
 0x285   :  { %1041 = vst.msk [vmem:[%s1659_s5 + $0x18] sm:$0xff] %vm46_vm3, %v1025_v55  ;;  %850 = vst.msk [vmem:[%s1658_s4 + $0x20] sm:$0xff] %vm46_vm3, %v833_v56 }
 0x286   :  { %v778_v59 = vpop.xlane.xlu0 %777 }
 0x287   :  { %v834_v60 = vadd.f32 %v778_v59, %v738_v57  ;;  %v966_v4 = vpop.xlane.xlu1 %965  ;;  %v877_v59 = vld [vmem:[%s1659_s5 + $0x78] sm:$0xff] }
 0x288   :  { %v1026_v62 = vadd.f32 %v966_v4, %v866_v58 }
 0x289   :  { %851 = vst.msk [vmem:[%s1658_s4 + $0x28] sm:$0xff] %vm46_vm3, %v834_v60 }
 0x28a   :  { %1042 = vst.msk [vmem:[%s1659_s5 + $0x20] sm:$0xff] %vm46_vm3, %v1026_v62  ;;  %v971_v1 = vpop.xlane.xlu0 %970 }
 0x28b   :  { %v1027_v2 = vadd.f32 %v971_v1, %v867_v63  ;;  %v783_v3 = vpop.xlane.xlu1 %782 }
 0x28c   :  { %v835_v5 = vadd.f32 %v783_v3, %v739_v0 }
 0x28d   :  { %1043 = vst.msk [vmem:[%s1659_s5 + $0x28] sm:$0xff] %vm46_vm3, %v1027_v2 }
 0x28e   :  { %852 = vst.msk [vmem:[%s1658_s4 + $0x30] sm:$0xff] %vm46_vm3, %v835_v5  ;;  %v788_v8 = vpop.xlane.xlu0 %787 }
 0x28f   :  { %v836_v9 = vadd.f32 %v788_v8, %v740_v6  ;;  %v976_v10 = vpop.xlane.xlu1 %975 }
 0x290   :  { %v1028_v11 = vadd.f32 %v976_v10, %v868_v7 }
 0x291   :  { %853 = vst.msk [vmem:[%s1658_s4 + $0x38] sm:$0xff] %vm46_vm3, %v836_v9 }
 0x292   :  { %1044 = vst.msk [vmem:[%s1659_s5 + $0x30] sm:$0xff] %vm46_vm3, %v1028_v11  ;;  %v981_v14 = vpop.xlane.xlu0 %980 }
 0x293   :  { %v1029_v15 = vadd.f32 %v981_v14, %v869_v12  ;;  %v793_v16 = vpop.xlane.xlu1 %792 }
 0x294   :  { %v837_v17 = vadd.f32 %v793_v16, %v741_v13 }
 0x295   :  { %1045 = vst.msk [vmem:[%s1659_s5 + $0x38] sm:$0xff] %vm46_vm3, %v1029_v15 }
 0x296   :  { %854 = vst.msk [vmem:[%s1658_s4 + $0x40] sm:$0xff] %vm46_vm3, %v837_v17  ;;  %v798_v20 = vpop.xlane.xlu0 %797 }
 0x297   :  { %v838_v21 = vadd.f32 %v798_v20, %v742_v18  ;;  %v986_v61 = vpop.xlane.xlu1 %985 }
 0x298   :  { %v1030_v22 = vadd.f32 %v986_v61, %v870_v19 }
 0x299   :  { %855 = vst.msk [vmem:[%s1658_s4 + $0x48] sm:$0xff] %vm46_vm3, %v838_v21 }
 0x29a   :  { %1046 = vst.msk [vmem:[%s1659_s5 + $0x40] sm:$0xff] %vm46_vm3, %v1030_v22  ;;  %v991_v25 = vpop.xlane.xlu0 %990 }
 0x29b   :  { %v1031_v26 = vadd.f32 %v991_v25, %v871_v23  ;;  %v803_v27 = vpop.xlane.xlu1 %802 }
 0x29c   :  { %v839_v28 = vadd.f32 %v803_v27, %v743_v24 }
 0x29d   :  { %1047 = vst.msk [vmem:[%s1659_s5 + $0x48] sm:$0xff] %vm46_vm3, %v1031_v26 }
 0x29e   :  { %856 = vst.msk [vmem:[%s1658_s4 + $0x50] sm:$0xff] %vm46_vm3, %v839_v28  ;;  %v808_v31 = vpop.xlane.xlu0 %807 }
 0x29f   :  { %v840_v32 = vadd.f32 %v808_v31, %v744_v29  ;;  %v996_v33 = vpop.xlane.xlu1 %995 }
 0x2a0   :  { %v1032_v34 = vadd.f32 %v996_v33, %v872_v30 }
 0x2a1   :  { %857 = vst.msk [vmem:[%s1658_s4 + $0x58] sm:$0xff] %vm46_vm3, %v840_v32 }
 0x2a2   :  { %1048 = vst.msk [vmem:[%s1659_s5 + $0x50] sm:$0xff] %vm46_vm3, %v1032_v34  ;;  %v1001_v37 = vpop.xlane.xlu0 %1000 }
 0x2a3   :  { %v1033_v38 = vadd.f32 %v1001_v37, %v873_v35  ;;  %v813_v39 = vpop.xlane.xlu1 %812 }
 0x2a4   :  { %v841_v40 = vadd.f32 %v813_v39, %v745_v36 }
 0x2a5   :  { %1049 = vst.msk [vmem:[%s1659_s5 + $0x58] sm:$0xff] %vm46_vm3, %v1033_v38 }
 0x2a6   :  { %858 = vst.msk [vmem:[%s1658_s4 + $0x60] sm:$0xff] %vm46_vm3, %v841_v40  ;;  %v818_v43 = vpop.xlane.xlu0 %817 }
 0x2a7   :  { %v842_v44 = vadd.f32 %v818_v43, %v746_v41  ;;  %v1006_v45 = vpop.xlane.xlu1 %1005 }
 0x2a8   :  { %v1034_v46 = vadd.f32 %v1006_v45, %v874_v42 }
 0x2a9   :  { %859 = vst.msk [vmem:[%s1658_s4 + $0x68] sm:$0xff] %vm46_vm3, %v842_v44 }
 0x2aa   :  { %1050 = vst.msk [vmem:[%s1659_s5 + $0x60] sm:$0xff] %vm46_vm3, %v1034_v46  ;;  %v1011_v49 = vpop.xlane.xlu0 %1010 }
 0x2ab   :  { %v1035_v50 = vadd.f32 %v1011_v49, %v875_v47  ;;  %v823_v51 = vpop.xlane.xlu1 %822 }
 0x2ac   :  { %v843_v52 = vadd.f32 %v823_v51, %v747_v48 }
 0x2ad   :  { %1051 = vst.msk [vmem:[%s1659_s5 + $0x68] sm:$0xff] %vm46_vm3, %v1035_v50 }
 0x2ae   :  { %860 = vst.msk [vmem:[%s1658_s4 + $0x70] sm:$0xff] %vm46_vm3, %v843_v52  ;;  %v828_v55 = vpop.xlane.xlu0 %827 }
 0x2af   :  { %v844_v56 = vadd.f32 %v828_v55, %v748_v53  ;;  %v1016_v57 = vpop.xlane.xlu1 %1015 }
 0x2b0   :  { %v1036_v58 = vadd.f32 %v1016_v57, %v876_v54 }
 0x2b1   :  { %861 = vst.msk [vmem:[%s1658_s4 + $0x78] sm:$0xff] %vm46_vm3, %v844_v56 }
 0x2b2   :  { %1052 = vst.msk [vmem:[%s1659_s5 + $0x70] sm:$0xff] %vm46_vm3, %v1036_v58  ;;  %v1021_v60 = vpop.xlane.xlu0 %1020 }
 0x2b3   :  { %v1037_v4 = vadd.f32 %v1021_v60, %v877_v59 }
 0x2b5   :  { %1053 = vst.msk [vmem:[%s1659_s5 + $0x78] sm:$0xff] %vm46_vm3, %v1037_v4 }

</bundles_post_ra>
